<compile_context>
chip_gen: v6e
topology: v6e:2x2x1
jax: 0.10.0
libtpu: 0.0.40
codegen_flags: <defaults>
</compile_context>

<pallas_src>
import jax
import jax.numpy as jnp
from jax import lax
from jax.experimental import pallas as pl
from jax.experimental.pallas import tpu as pltpu

KSIZE = 7
PAD = 3


def _tree_sum(terms):
    """Log-depth pairwise sum -> independent add chains the VALU can pipeline."""
    terms = list(terms)
    while len(terms) > 1:
        nxt = [terms[i] + terms[i + 1] for i in range(0, len(terms) - 1, 2)]
        if len(terms) % 2:
            nxt.append(terms[-1])
        terms = nxt
    return terms[0]


def _col_index(flat, w):
    """flat % w for the flattened spatial iota (column index of each lane)."""
    if (w & (w - 1)) == 0:          # power of two: single bitwise AND on the VPU
        return jnp.bitwise_and(flat, w - 1)
    # Fallback for non-power-of-two W (not exercised by the test below).
    return lax.rem(flat, jnp.int32(w))


def _make_sam_kernel(C, H, W):
    HW = H * W

    def kernel(x_ref, w_ref, out_ref):
        # x_ref:   (1, C, HW) VMEM block (lane-dense: HW is the lane axis).
        # w_ref:   (2*7*7,)   flattened conv weight in SMEM (scalar reads).
        # out_ref: (1, C, HW)
        x = x_ref[0]                                     # (C, HW), native dtype

        # ---- channel max / mean on the lane-dense view -------------------
        xmax = jnp.max(x, axis=0, keepdims=True).astype(jnp.float32)   # (1, HW)
        xavg = (jnp.sum(x, axis=0, keepdims=True).astype(jnp.float32)
                * (1.0 / C))                                            # (1, HW)
        planes = (xmax, xavg)

        # Flattened spatial index + column index (computed once, hoisted).
        flat = lax.broadcasted_iota(jnp.int32, (1, HW), 1)
        col = _col_index(flat, W)

        # ---- horizontal taps: 12 lane-rolls (XLU) + column masks ---------
        # a[c][dx][j] = plane_c[row_j, col_j + dx - PAD]   (0 outside the row)
        a = []
        for c in range(2):
            per_dx = []
            for dx in range(KSIZE):
                off = dx - PAD
                if off == 0:
                    per_dx.append(planes[c])
                    continue
                rolled = pltpu.roll(planes[c], (-off) % HW, 1)
                if off > 0:
                    ok = col < (W - off)
                else:
                    ok = col >= (-off)
                per_dx.append(jnp.where(ok, rolled, 0.0))
            a.append(per_dx)

        # ---- horizontal accumulation: 14 independent tree-summed chains --
        # p[c][dy][j] = sum_dx w[c, dy, dx] * a[c][dx][j]
        p_planes = []
        for c in range(2):
            for dy in range(KSIZE):
                prods = [a[c][dx] * w_ref[(c * KSIZE + dy) * KSIZE + dx]
                         for dx in range(KSIZE)]
                p_planes.append((dy, _tree_sum(prods)))

        # ---- vertical combine: 12 whole-row lane-rolls + row masks -------
        # Shifts by multiples of W keep the column index, so the col masks
        # applied above remain valid; wrapped rows are killed by the row mask.
        terms = []
        for dy, plane in p_planes:
            k = dy - PAD
            if k == 0:
                terms.append(plane)
                continue
            rolled = pltpu.roll(plane, (-k * W) % HW, 1)
            if k > 0:
                ok = flat < (HW - k * W)       # last k rows have no source
            else:
                ok = flat >= (-k) * W          # first -k rows have no source
            terms.append(jnp.where(ok, rolled, 0.0))
        conv = _tree_sum(terms)                # (1, HW) float32

        # ---- sigmoid gate and broadcast multiply (lane-dense store) ------
        # exp rides the EUP; reciprocal avoids hand-written 1/(1+e).  Using
        # approx=False keeps the result exact; approx=True would offload the
        # reciprocal fully to the EUP at slightly looser precision.
        gate = pl.reciprocal(1.0 + jnp.exp(-conv), approx=False)       # (1, HW)
        out_ref[0] = (gate * x).astype(out_ref.dtype)

    return kernel


def sam(x, conv_w):
    """x: (B, C, H, W) NCHW. conv_w: (1, 2, 7, 7) like nn.Conv2d weight."""
    B, C, H, W = x.shape
    HW = H * W
    x_flat = x.reshape(B, C, HW)                         # free for contiguous NCHW
    w_flat = conv_w.reshape(-1).astype(jnp.float32)      # (98,) -> SMEM scalars

    out_flat = pl.pallas_call(
        _make_sam_kernel(C, H, W),
        out_shape=jax.ShapeDtypeStruct((B, C, HW), x.dtype),
        grid=(B,),
        in_specs=[
            pl.BlockSpec((1, C, HW), lambda b: (b, 0, 0)),
            pl.BlockSpec(memory_space=pltpu.MemorySpace.SMEM),
        ],
        out_specs=pl.BlockSpec((1, C, HW), lambda b: (b, 0, 0)),
        compiler_params=pltpu.CompilerParams(
            dimension_semantics=("parallel",),
            # Explicit headroom; safe on v5e/v6e (128 MiB) and v7x (64 MiB).
            vmem_limit_bytes=32 * 1024 * 1024,
        ),
    )(x_flat, w_flat)
    return out_flat.reshape(B, C, H, W)


def sam_ref(x, conv_w):
    """Pure-JAX reference mirroring the PyTorch forward (bias=False)."""
    xmax = jnp.max(x, axis=1, keepdims=True)
    xavg = jnp.mean(x, axis=1, keepdims=True)
    cat = jnp.concatenate([xmax, xavg], axis=1)          # (B, 2, H, W)
    conv = lax.conv_general_dilated(
        cat, conv_w, window_strides=(1, 1),
        padding=((PAD, PAD), (PAD, PAD)),
        dimension_numbers=("NCHW", "OIHW", "NCHW"))
    return jax.nn.sigmoid(conv) * x


if __name__ == "__main__":
    B, C, H, W = 2, 4, 16, 16

    key = jax.random.PRNGKey(0)
    kx, kw = jax.random.split(key)
    x = jax.random.normal(kx, (B, C, H, W), dtype=jnp.float32)

    # PyTorch Conv2d default init: U(-1/sqrt(fan_in), 1/sqrt(fan_in)), fan_in = 2*7*7.
    bound = 1.0 / jnp.sqrt(jnp.float32(2 * KSIZE * KSIZE))
    conv_w = jax.random.uniform(kw, (1, 2, KSIZE, KSIZE), jnp.float32, -bound, bound)

    y = sam(x, conv_w)
    jax.block_until_ready(y)

    y_ref = sam_ref(x, conv_w)
    assert y.shape == (B, C, H, W)
    err = float(jnp.max(jnp.abs(y - y_ref)))
    assert jnp.allclose(y, y_ref, rtol=1e-3, atol=1e-4), err

    print("KERNEL_OK")
</pallas_src>

<mosaic_0001>
module attributes {stable_mosaic.version = 11 : i64} {
  func.func @kernel(%arg0: i32, %arg1: memref<1x4x256xf32, #tpu.memory_space<vmem>>, %arg2: memref<98xf32, #tpu.memory_space<smem>>, %arg3: memref<1x4x256xf32, #tpu.memory_space<vmem>>) attributes {dimension_semantics = [#tpu.dimension_semantics<parallel>], iteration_bounds = array<i64: 2>, scalar_prefetch = 0 : i64, scratch_operands = 0 : i64, tpu.core_type = #tpu.core_type<tc>, window_params = [{transform_indices = @transform_0, window_bounds = array<i64: 1, 4, 256>}, {transform_indices = @transform_1, window_bounds = array<i64: 98>}, {transform_indices = @transform_2, window_bounds = array<i64: 1, 4, 256>}]} {
    %c0 = arith.constant 0 : index
    %c0_0 = arith.constant 0 : index
    %c0_1 = arith.constant 0 : index
    %0 = vector.load %arg1[%c0, %c0_0, %c0_1] : memref<1x4x256xf32, #tpu.memory_space<vmem>>, vector<1x4x256xf32>
    %1 = vector.shape_cast %0 : vector<1x4x256xf32> to vector<4x256xf32>
    %cst = arith.constant dense<0xFF800000> : vector<256xf32>
    %2 = vector.multi_reduction <maximumf>, %1, %cst [0] : vector<4x256xf32> to vector<256xf32>
    %3 = vector.shape_cast %2 : vector<256xf32> to vector<1x256xf32>
    %cst_2 = arith.constant dense<0.000000e+00> : vector<256xf32>
    %4 = vector.multi_reduction <add>, %1, %cst_2 [0] : vector<4x256xf32> to vector<256xf32>
    %5 = vector.shape_cast %4 : vector<256xf32> to vector<1x256xf32>
    %cst_3 = arith.constant 2.500000e-01 : f32
    %6 = vector.broadcast %cst_3 : f32 to vector<1x256xf32>
    %7 = arith.mulf %5, %6 : vector<1x256xf32>
    %8 = tpu.iota {dimensions = array<i32: 1>} : vector<1x256xi32>
    %c15_i32 = arith.constant 15 : i32
    %9 = vector.broadcast %c15_i32 : i32 to vector<1x256xi32>
    %10 = arith.andi %8, %9 : vector<1x256xi32>
    %c3_i32 = arith.constant 3 : i32
    %11 = tpu.dynamic_rotate %3 by %c3_i32 dim 1 : vector<1x256xf32>, i32 -> vector<1x256xf32>
    %c3_i32_4 = arith.constant 3 : i32
    %12 = vector.broadcast %c3_i32_4 : i32 to vector<1x256xi32>
    %13 = arith.cmpi sge, %10, %12 : vector<1x256xi32>
    %cst_5 = arith.constant 0.000000e+00 : f32
    %14 = vector.broadcast %cst_5 : f32 to vector<1x256xf32>
    %15 = arith.select %13, %11, %14 : vector<1x256xi1>, vector<1x256xf32>
    %c2_i32 = arith.constant 2 : i32
    %16 = tpu.dynamic_rotate %3 by %c2_i32 dim 1 : vector<1x256xf32>, i32 -> vector<1x256xf32>
    %c2_i32_6 = arith.constant 2 : i32
    %17 = vector.broadcast %c2_i32_6 : i32 to vector<1x256xi32>
    %18 = arith.cmpi sge, %10, %17 : vector<1x256xi32>
    %cst_7 = arith.constant 0.000000e+00 : f32
    %19 = vector.broadcast %cst_7 : f32 to vector<1x256xf32>
    %20 = arith.select %18, %16, %19 : vector<1x256xi1>, vector<1x256xf32>
    %c1_i32 = arith.constant 1 : i32
    %21 = tpu.dynamic_rotate %3 by %c1_i32 dim 1 : vector<1x256xf32>, i32 -> vector<1x256xf32>
    %c1_i32_8 = arith.constant 1 : i32
    %22 = vector.broadcast %c1_i32_8 : i32 to vector<1x256xi32>
    %23 = arith.cmpi sge, %10, %22 : vector<1x256xi32>
    %cst_9 = arith.constant 0.000000e+00 : f32
    %24 = vector.broadcast %cst_9 : f32 to vector<1x256xf32>
    %25 = arith.select %23, %21, %24 : vector<1x256xi1>, vector<1x256xf32>
    %c255_i32 = arith.constant 255 : i32
    %26 = tpu.dynamic_rotate %3 by %c255_i32 dim 1 : vector<1x256xf32>, i32 -> vector<1x256xf32>
    %c15_i32_10 = arith.constant 15 : i32
    %27 = vector.broadcast %c15_i32_10 : i32 to vector<1x256xi32>
    %28 = arith.cmpi slt, %10, %27 : vector<1x256xi32>
    %cst_11 = arith.constant 0.000000e+00 : f32
    %29 = vector.broadcast %cst_11 : f32 to vector<1x256xf32>
    %30 = arith.select %28, %26, %29 : vector<1x256xi1>, vector<1x256xf32>
    %c254_i32 = arith.constant 254 : i32
    %31 = tpu.dynamic_rotate %3 by %c254_i32 dim 1 : vector<1x256xf32>, i32 -> vector<1x256xf32>
    %c14_i32 = arith.constant 14 : i32
    %32 = vector.broadcast %c14_i32 : i32 to vector<1x256xi32>
    %33 = arith.cmpi slt, %10, %32 : vector<1x256xi32>
    %cst_12 = arith.constant 0.000000e+00 : f32
    %34 = vector.broadcast %cst_12 : f32 to vector<1x256xf32>
    %35 = arith.select %33, %31, %34 : vector<1x256xi1>, vector<1x256xf32>
    %c253_i32 = arith.constant 253 : i32
    %36 = tpu.dynamic_rotate %3 by %c253_i32 dim 1 : vector<1x256xf32>, i32 -> vector<1x256xf32>
    %c13_i32 = arith.constant 13 : i32
    %37 = vector.broadcast %c13_i32 : i32 to vector<1x256xi32>
    %38 = arith.cmpi slt, %10, %37 : vector<1x256xi32>
    %cst_13 = arith.constant 0.000000e+00 : f32
    %39 = vector.broadcast %cst_13 : f32 to vector<1x256xf32>
    %40 = arith.select %38, %36, %39 : vector<1x256xi1>, vector<1x256xf32>
    %c3_i32_14 = arith.constant 3 : i32
    %41 = tpu.dynamic_rotate %7 by %c3_i32_14 dim 1 : vector<1x256xf32>, i32 -> vector<1x256xf32>
    %c3_i32_15 = arith.constant 3 : i32
    %42 = vector.broadcast %c3_i32_15 : i32 to vector<1x256xi32>
    %43 = arith.cmpi sge, %10, %42 : vector<1x256xi32>
    %cst_16 = arith.constant 0.000000e+00 : f32
    %44 = vector.broadcast %cst_16 : f32 to vector<1x256xf32>
    %45 = arith.select %43, %41, %44 : vector<1x256xi1>, vector<1x256xf32>
    %c2_i32_17 = arith.constant 2 : i32
    %46 = tpu.dynamic_rotate %7 by %c2_i32_17 dim 1 : vector<1x256xf32>, i32 -> vector<1x256xf32>
    %c2_i32_18 = arith.constant 2 : i32
    %47 = vector.broadcast %c2_i32_18 : i32 to vector<1x256xi32>
    %48 = arith.cmpi sge, %10, %47 : vector<1x256xi32>
    %cst_19 = arith.constant 0.000000e+00 : f32
    %49 = vector.broadcast %cst_19 : f32 to vector<1x256xf32>
    %50 = arith.select %48, %46, %49 : vector<1x256xi1>, vector<1x256xf32>
    %c1_i32_20 = arith.constant 1 : i32
    %51 = tpu.dynamic_rotate %7 by %c1_i32_20 dim 1 : vector<1x256xf32>, i32 -> vector<1x256xf32>
    %c1_i32_21 = arith.constant 1 : i32
    %52 = vector.broadcast %c1_i32_21 : i32 to vector<1x256xi32>
    %53 = arith.cmpi sge, %10, %52 : vector<1x256xi32>
    %cst_22 = arith.constant 0.000000e+00 : f32
    %54 = vector.broadcast %cst_22 : f32 to vector<1x256xf32>
    %55 = arith.select %53, %51, %54 : vector<1x256xi1>, vector<1x256xf32>
    %c255_i32_23 = arith.constant 255 : i32
    %56 = tpu.dynamic_rotate %7 by %c255_i32_23 dim 1 : vector<1x256xf32>, i32 -> vector<1x256xf32>
    %c15_i32_24 = arith.constant 15 : i32
    %57 = vector.broadcast %c15_i32_24 : i32 to vector<1x256xi32>
    %58 = arith.cmpi slt, %10, %57 : vector<1x256xi32>
    %cst_25 = arith.constant 0.000000e+00 : f32
    %59 = vector.broadcast %cst_25 : f32 to vector<1x256xf32>
    %60 = arith.select %58, %56, %59 : vector<1x256xi1>, vector<1x256xf32>
    %c254_i32_26 = arith.constant 254 : i32
    %61 = tpu.dynamic_rotate %7 by %c254_i32_26 dim 1 : vector<1x256xf32>, i32 -> vector<1x256xf32>
    %c14_i32_27 = arith.constant 14 : i32
    %62 = vector.broadcast %c14_i32_27 : i32 to vector<1x256xi32>
    %63 = arith.cmpi slt, %10, %62 : vector<1x256xi32>
    %cst_28 = arith.constant 0.000000e+00 : f32
    %64 = vector.broadcast %cst_28 : f32 to vector<1x256xf32>
    %65 = arith.select %63, %61, %64 : vector<1x256xi1>, vector<1x256xf32>
    %c253_i32_29 = arith.constant 253 : i32
    %66 = tpu.dynamic_rotate %7 by %c253_i32_29 dim 1 : vector<1x256xf32>, i32 -> vector<1x256xf32>
    %c13_i32_30 = arith.constant 13 : i32
    %67 = vector.broadcast %c13_i32_30 : i32 to vector<1x256xi32>
    %68 = arith.cmpi slt, %10, %67 : vector<1x256xi32>
    %cst_31 = arith.constant 0.000000e+00 : f32
    %69 = vector.broadcast %cst_31 : f32 to vector<1x256xf32>
    %70 = arith.select %68, %66, %69 : vector<1x256xi1>, vector<1x256xf32>
    %c0_32 = arith.constant 0 : index
    %71 = memref.load %arg2[%c0_32] : memref<98xf32, #tpu.memory_space<smem>>
    %72 = vector.broadcast %71 : f32 to vector<1x256xf32>
    %73 = arith.mulf %15, %72 : vector<1x256xf32>
    %c1 = arith.constant 1 : index
    %74 = memref.load %arg2[%c1] : memref<98xf32, #tpu.memory_space<smem>>
    %75 = vector.broadcast %74 : f32 to vector<1x256xf32>
    %76 = arith.mulf %20, %75 : vector<1x256xf32>
    %c2 = arith.constant 2 : index
    %77 = memref.load %arg2[%c2] : memref<98xf32, #tpu.memory_space<smem>>
    %78 = vector.broadcast %77 : f32 to vector<1x256xf32>
    %79 = arith.mulf %25, %78 : vector<1x256xf32>
    %c3 = arith.constant 3 : index
    %80 = memref.load %arg2[%c3] : memref<98xf32, #tpu.memory_space<smem>>
    %81 = vector.broadcast %80 : f32 to vector<1x256xf32>
    %82 = arith.mulf %3, %81 : vector<1x256xf32>
    %c4 = arith.constant 4 : index
    %83 = memref.load %arg2[%c4] : memref<98xf32, #tpu.memory_space<smem>>
    %84 = vector.broadcast %83 : f32 to vector<1x256xf32>
    %85 = arith.mulf %30, %84 : vector<1x256xf32>
    %c5 = arith.constant 5 : index
    %86 = memref.load %arg2[%c5] : memref<98xf32, #tpu.memory_space<smem>>
    %87 = vector.broadcast %86 : f32 to vector<1x256xf32>
    %88 = arith.mulf %35, %87 : vector<1x256xf32>
    %c6 = arith.constant 6 : index
    %89 = memref.load %arg2[%c6] : memref<98xf32, #tpu.memory_space<smem>>
    %90 = vector.broadcast %89 : f32 to vector<1x256xf32>
    %91 = arith.mulf %40, %90 : vector<1x256xf32>
    %92 = arith.addf %73, %76 : vector<1x256xf32>
    %93 = arith.addf %79, %82 : vector<1x256xf32>
    %94 = arith.addf %85, %88 : vector<1x256xf32>
    %95 = arith.addf %92, %93 : vector<1x256xf32>
    %96 = arith.addf %94, %91 : vector<1x256xf32>
    %97 = arith.addf %95, %96 : vector<1x256xf32>
    %c7 = arith.constant 7 : index
    %98 = memref.load %arg2[%c7] : memref<98xf32, #tpu.memory_space<smem>>
    %99 = vector.broadcast %98 : f32 to vector<1x256xf32>
    %100 = arith.mulf %15, %99 : vector<1x256xf32>
    %c8 = arith.constant 8 : index
    %101 = memref.load %arg2[%c8] : memref<98xf32, #tpu.memory_space<smem>>
    %102 = vector.broadcast %101 : f32 to vector<1x256xf32>
    %103 = arith.mulf %20, %102 : vector<1x256xf32>
    %c9 = arith.constant 9 : index
    %104 = memref.load %arg2[%c9] : memref<98xf32, #tpu.memory_space<smem>>
    %105 = vector.broadcast %104 : f32 to vector<1x256xf32>
    %106 = arith.mulf %25, %105 : vector<1x256xf32>
    %c10 = arith.constant 10 : index
    %107 = memref.load %arg2[%c10] : memref<98xf32, #tpu.memory_space<smem>>
    %108 = vector.broadcast %107 : f32 to vector<1x256xf32>
    %109 = arith.mulf %3, %108 : vector<1x256xf32>
    %c11 = arith.constant 11 : index
    %110 = memref.load %arg2[%c11] : memref<98xf32, #tpu.memory_space<smem>>
    %111 = vector.broadcast %110 : f32 to vector<1x256xf32>
    %112 = arith.mulf %30, %111 : vector<1x256xf32>
    %c12 = arith.constant 12 : index
    %113 = memref.load %arg2[%c12] : memref<98xf32, #tpu.memory_space<smem>>
    %114 = vector.broadcast %113 : f32 to vector<1x256xf32>
    %115 = arith.mulf %35, %114 : vector<1x256xf32>
    %c13 = arith.constant 13 : index
    %116 = memref.load %arg2[%c13] : memref<98xf32, #tpu.memory_space<smem>>
    %117 = vector.broadcast %116 : f32 to vector<1x256xf32>
    %118 = arith.mulf %40, %117 : vector<1x256xf32>
    %119 = arith.addf %100, %103 : vector<1x256xf32>
    %120 = arith.addf %106, %109 : vector<1x256xf32>
    %121 = arith.addf %112, %115 : vector<1x256xf32>
    %122 = arith.addf %119, %120 : vector<1x256xf32>
    %123 = arith.addf %121, %118 : vector<1x256xf32>
    %124 = arith.addf %122, %123 : vector<1x256xf32>
    %c14 = arith.constant 14 : index
    %125 = memref.load %arg2[%c14] : memref<98xf32, #tpu.memory_space<smem>>
    %126 = vector.broadcast %125 : f32 to vector<1x256xf32>
    %127 = arith.mulf %15, %126 : vector<1x256xf32>
    %c15 = arith.constant 15 : index
    %128 = memref.load %arg2[%c15] : memref<98xf32, #tpu.memory_space<smem>>
    %129 = vector.broadcast %128 : f32 to vector<1x256xf32>
    %130 = arith.mulf %20, %129 : vector<1x256xf32>
    %c16 = arith.constant 16 : index
    %131 = memref.load %arg2[%c16] : memref<98xf32, #tpu.memory_space<smem>>
    %132 = vector.broadcast %131 : f32 to vector<1x256xf32>
    %133 = arith.mulf %25, %132 : vector<1x256xf32>
    %c17 = arith.constant 17 : index
    %134 = memref.load %arg2[%c17] : memref<98xf32, #tpu.memory_space<smem>>
    %135 = vector.broadcast %134 : f32 to vector<1x256xf32>
    %136 = arith.mulf %3, %135 : vector<1x256xf32>
    %c18 = arith.constant 18 : index
    %137 = memref.load %arg2[%c18] : memref<98xf32, #tpu.memory_space<smem>>
    %138 = vector.broadcast %137 : f32 to vector<1x256xf32>
    %139 = arith.mulf %30, %138 : vector<1x256xf32>
    %c19 = arith.constant 19 : index
    %140 = memref.load %arg2[%c19] : memref<98xf32, #tpu.memory_space<smem>>
    %141 = vector.broadcast %140 : f32 to vector<1x256xf32>
    %142 = arith.mulf %35, %141 : vector<1x256xf32>
    %c20 = arith.constant 20 : index
    %143 = memref.load %arg2[%c20] : memref<98xf32, #tpu.memory_space<smem>>
    %144 = vector.broadcast %143 : f32 to vector<1x256xf32>
    %145 = arith.mulf %40, %144 : vector<1x256xf32>
    %146 = arith.addf %127, %130 : vector<1x256xf32>
    %147 = arith.addf %133, %136 : vector<1x256xf32>
    %148 = arith.addf %139, %142 : vector<1x256xf32>
    %149 = arith.addf %146, %147 : vector<1x256xf32>
    %150 = arith.addf %148, %145 : vector<1x256xf32>
    %151 = arith.addf %149, %150 : vector<1x256xf32>
    %c21 = arith.constant 21 : index
    %152 = memref.load %arg2[%c21] : memref<98xf32, #tpu.memory_space<smem>>
    %153 = vector.broadcast %152 : f32 to vector<1x256xf32>
    %154 = arith.mulf %15, %153 : vector<1x256xf32>
    %c22 = arith.constant 22 : index
    %155 = memref.load %arg2[%c22] : memref<98xf32, #tpu.memory_space<smem>>
    %156 = vector.broadcast %155 : f32 to vector<1x256xf32>
    %157 = arith.mulf %20, %156 : vector<1x256xf32>
    %c23 = arith.constant 23 : index
    %158 = memref.load %arg2[%c23] : memref<98xf32, #tpu.memory_space<smem>>
    %159 = vector.broadcast %158 : f32 to vector<1x256xf32>
    %160 = arith.mulf %25, %159 : vector<1x256xf32>
    %c24 = arith.constant 24 : index
    %161 = memref.load %arg2[%c24] : memref<98xf32, #tpu.memory_space<smem>>
    %162 = vector.broadcast %161 : f32 to vector<1x256xf32>
    %163 = arith.mulf %3, %162 : vector<1x256xf32>
    %c25 = arith.constant 25 : index
    %164 = memref.load %arg2[%c25] : memref<98xf32, #tpu.memory_space<smem>>
    %165 = vector.broadcast %164 : f32 to vector<1x256xf32>
    %166 = arith.mulf %30, %165 : vector<1x256xf32>
    %c26 = arith.constant 26 : index
    %167 = memref.load %arg2[%c26] : memref<98xf32, #tpu.memory_space<smem>>
    %168 = vector.broadcast %167 : f32 to vector<1x256xf32>
    %169 = arith.mulf %35, %168 : vector<1x256xf32>
    %c27 = arith.constant 27 : index
    %170 = memref.load %arg2[%c27] : memref<98xf32, #tpu.memory_space<smem>>
    %171 = vector.broadcast %170 : f32 to vector<1x256xf32>
    %172 = arith.mulf %40, %171 : vector<1x256xf32>
    %173 = arith.addf %154, %157 : vector<1x256xf32>
    %174 = arith.addf %160, %163 : vector<1x256xf32>
    %175 = arith.addf %166, %169 : vector<1x256xf32>
    %176 = arith.addf %173, %174 : vector<1x256xf32>
    %177 = arith.addf %175, %172 : vector<1x256xf32>
    %178 = arith.addf %176, %177 : vector<1x256xf32>
    %c28 = arith.constant 28 : index
    %179 = memref.load %arg2[%c28] : memref<98xf32, #tpu.memory_space<smem>>
    %180 = vector.broadcast %179 : f32 to vector<1x256xf32>
    %181 = arith.mulf %15, %180 : vector<1x256xf32>
    %c29 = arith.constant 29 : index
    %182 = memref.load %arg2[%c29] : memref<98xf32, #tpu.memory_space<smem>>
    %183 = vector.broadcast %182 : f32 to vector<1x256xf32>
    %184 = arith.mulf %20, %183 : vector<1x256xf32>
    %c30 = arith.constant 30 : index
    %185 = memref.load %arg2[%c30] : memref<98xf32, #tpu.memory_space<smem>>
    %186 = vector.broadcast %185 : f32 to vector<1x256xf32>
    %187 = arith.mulf %25, %186 : vector<1x256xf32>
    %c31 = arith.constant 31 : index
    %188 = memref.load %arg2[%c31] : memref<98xf32, #tpu.memory_space<smem>>
    %189 = vector.broadcast %188 : f32 to vector<1x256xf32>
    %190 = arith.mulf %3, %189 : vector<1x256xf32>
    %c32 = arith.constant 32 : index
    %191 = memref.load %arg2[%c32] : memref<98xf32, #tpu.memory_space<smem>>
    %192 = vector.broadcast %191 : f32 to vector<1x256xf32>
    %193 = arith.mulf %30, %192 : vector<1x256xf32>
    %c33 = arith.constant 33 : index
    %194 = memref.load %arg2[%c33] : memref<98xf32, #tpu.memory_space<smem>>
    %195 = vector.broadcast %194 : f32 to vector<1x256xf32>
    %196 = arith.mulf %35, %195 : vector<1x256xf32>
    %c34 = arith.constant 34 : index
    %197 = memref.load %arg2[%c34] : memref<98xf32, #tpu.memory_space<smem>>
    %198 = vector.broadcast %197 : f32 to vector<1x256xf32>
    %199 = arith.mulf %40, %198 : vector<1x256xf32>
    %200 = arith.addf %181, %184 : vector<1x256xf32>
    %201 = arith.addf %187, %190 : vector<1x256xf32>
    %202 = arith.addf %193, %196 : vector<1x256xf32>
    %203 = arith.addf %200, %201 : vector<1x256xf32>
    %204 = arith.addf %202, %199 : vector<1x256xf32>
    %205 = arith.addf %203, %204 : vector<1x256xf32>
    %c35 = arith.constant 35 : index
    %206 = memref.load %arg2[%c35] : memref<98xf32, #tpu.memory_space<smem>>
    %207 = vector.broadcast %206 : f32 to vector<1x256xf32>
    %208 = arith.mulf %15, %207 : vector<1x256xf32>
    %c36 = arith.constant 36 : index
    %209 = memref.load %arg2[%c36] : memref<98xf32, #tpu.memory_space<smem>>
    %210 = vector.broadcast %209 : f32 to vector<1x256xf32>
    %211 = arith.mulf %20, %210 : vector<1x256xf32>
    %c37 = arith.constant 37 : index
    %212 = memref.load %arg2[%c37] : memref<98xf32, #tpu.memory_space<smem>>
    %213 = vector.broadcast %212 : f32 to vector<1x256xf32>
    %214 = arith.mulf %25, %213 : vector<1x256xf32>
    %c38 = arith.constant 38 : index
    %215 = memref.load %arg2[%c38] : memref<98xf32, #tpu.memory_space<smem>>
    %216 = vector.broadcast %215 : f32 to vector<1x256xf32>
    %217 = arith.mulf %3, %216 : vector<1x256xf32>
    %c39 = arith.constant 39 : index
    %218 = memref.load %arg2[%c39] : memref<98xf32, #tpu.memory_space<smem>>
    %219 = vector.broadcast %218 : f32 to vector<1x256xf32>
    %220 = arith.mulf %30, %219 : vector<1x256xf32>
    %c40 = arith.constant 40 : index
    %221 = memref.load %arg2[%c40] : memref<98xf32, #tpu.memory_space<smem>>
    %222 = vector.broadcast %221 : f32 to vector<1x256xf32>
    %223 = arith.mulf %35, %222 : vector<1x256xf32>
    %c41 = arith.constant 41 : index
    %224 = memref.load %arg2[%c41] : memref<98xf32, #tpu.memory_space<smem>>
    %225 = vector.broadcast %224 : f32 to vector<1x256xf32>
    %226 = arith.mulf %40, %225 : vector<1x256xf32>
    %227 = arith.addf %208, %211 : vector<1x256xf32>
    %228 = arith.addf %214, %217 : vector<1x256xf32>
    %229 = arith.addf %220, %223 : vector<1x256xf32>
    %230 = arith.addf %227, %228 : vector<1x256xf32>
    %231 = arith.addf %229, %226 : vector<1x256xf32>
    %232 = arith.addf %230, %231 : vector<1x256xf32>
    %c42 = arith.constant 42 : index
    %233 = memref.load %arg2[%c42] : memref<98xf32, #tpu.memory_space<smem>>
    %234 = vector.broadcast %233 : f32 to vector<1x256xf32>
    %235 = arith.mulf %15, %234 : vector<1x256xf32>
    %c43 = arith.constant 43 : index
    %236 = memref.load %arg2[%c43] : memref<98xf32, #tpu.memory_space<smem>>
    %237 = vector.broadcast %236 : f32 to vector<1x256xf32>
    %238 = arith.mulf %20, %237 : vector<1x256xf32>
    %c44 = arith.constant 44 : index
    %239 = memref.load %arg2[%c44] : memref<98xf32, #tpu.memory_space<smem>>
    %240 = vector.broadcast %239 : f32 to vector<1x256xf32>
    %241 = arith.mulf %25, %240 : vector<1x256xf32>
    %c45 = arith.constant 45 : index
    %242 = memref.load %arg2[%c45] : memref<98xf32, #tpu.memory_space<smem>>
    %243 = vector.broadcast %242 : f32 to vector<1x256xf32>
    %244 = arith.mulf %3, %243 : vector<1x256xf32>
    %c46 = arith.constant 46 : index
    %245 = memref.load %arg2[%c46] : memref<98xf32, #tpu.memory_space<smem>>
    %246 = vector.broadcast %245 : f32 to vector<1x256xf32>
    %247 = arith.mulf %30, %246 : vector<1x256xf32>
    %c47 = arith.constant 47 : index
    %248 = memref.load %arg2[%c47] : memref<98xf32, #tpu.memory_space<smem>>
    %249 = vector.broadcast %248 : f32 to vector<1x256xf32>
    %250 = arith.mulf %35, %249 : vector<1x256xf32>
    %c48 = arith.constant 48 : index
    %251 = memref.load %arg2[%c48] : memref<98xf32, #tpu.memory_space<smem>>
    %252 = vector.broadcast %251 : f32 to vector<1x256xf32>
    %253 = arith.mulf %40, %252 : vector<1x256xf32>
    %254 = arith.addf %235, %238 : vector<1x256xf32>
    %255 = arith.addf %241, %244 : vector<1x256xf32>
    %256 = arith.addf %247, %250 : vector<1x256xf32>
    %257 = arith.addf %254, %255 : vector<1x256xf32>
    %258 = arith.addf %256, %253 : vector<1x256xf32>
    %259 = arith.addf %257, %258 : vector<1x256xf32>
    %c49 = arith.constant 49 : index
    %260 = memref.load %arg2[%c49] : memref<98xf32, #tpu.memory_space<smem>>
    %261 = vector.broadcast %260 : f32 to vector<1x256xf32>
    %262 = arith.mulf %45, %261 : vector<1x256xf32>
    %c50 = arith.constant 50 : index
    %263 = memref.load %arg2[%c50] : memref<98xf32, #tpu.memory_space<smem>>
    %264 = vector.broadcast %263 : f32 to vector<1x256xf32>
    %265 = arith.mulf %50, %264 : vector<1x256xf32>
    %c51 = arith.constant 51 : index
    %266 = memref.load %arg2[%c51] : memref<98xf32, #tpu.memory_space<smem>>
    %267 = vector.broadcast %266 : f32 to vector<1x256xf32>
    %268 = arith.mulf %55, %267 : vector<1x256xf32>
    %c52 = arith.constant 52 : index
    %269 = memref.load %arg2[%c52] : memref<98xf32, #tpu.memory_space<smem>>
    %270 = vector.broadcast %269 : f32 to vector<1x256xf32>
    %271 = arith.mulf %7, %270 : vector<1x256xf32>
    %c53 = arith.constant 53 : index
    %272 = memref.load %arg2[%c53] : memref<98xf32, #tpu.memory_space<smem>>
    %273 = vector.broadcast %272 : f32 to vector<1x256xf32>
    %274 = arith.mulf %60, %273 : vector<1x256xf32>
    %c54 = arith.constant 54 : index
    %275 = memref.load %arg2[%c54] : memref<98xf32, #tpu.memory_space<smem>>
    %276 = vector.broadcast %275 : f32 to vector<1x256xf32>
    %277 = arith.mulf %65, %276 : vector<1x256xf32>
    %c55 = arith.constant 55 : index
    %278 = memref.load %arg2[%c55] : memref<98xf32, #tpu.memory_space<smem>>
    %279 = vector.broadcast %278 : f32 to vector<1x256xf32>
    %280 = arith.mulf %70, %279 : vector<1x256xf32>
    %281 = arith.addf %262, %265 : vector<1x256xf32>
    %282 = arith.addf %268, %271 : vector<1x256xf32>
    %283 = arith.addf %274, %277 : vector<1x256xf32>
    %284 = arith.addf %281, %282 : vector<1x256xf32>
    %285 = arith.addf %283, %280 : vector<1x256xf32>
    %286 = arith.addf %284, %285 : vector<1x256xf32>
    %c56 = arith.constant 56 : index
    %287 = memref.load %arg2[%c56] : memref<98xf32, #tpu.memory_space<smem>>
    %288 = vector.broadcast %287 : f32 to vector<1x256xf32>
    %289 = arith.mulf %45, %288 : vector<1x256xf32>
    %c57 = arith.constant 57 : index
    %290 = memref.load %arg2[%c57] : memref<98xf32, #tpu.memory_space<smem>>
    %291 = vector.broadcast %290 : f32 to vector<1x256xf32>
    %292 = arith.mulf %50, %291 : vector<1x256xf32>
    %c58 = arith.constant 58 : index
    %293 = memref.load %arg2[%c58] : memref<98xf32, #tpu.memory_space<smem>>
    %294 = vector.broadcast %293 : f32 to vector<1x256xf32>
    %295 = arith.mulf %55, %294 : vector<1x256xf32>
    %c59 = arith.constant 59 : index
    %296 = memref.load %arg2[%c59] : memref<98xf32, #tpu.memory_space<smem>>
    %297 = vector.broadcast %296 : f32 to vector<1x256xf32>
    %298 = arith.mulf %7, %297 : vector<1x256xf32>
    %c60 = arith.constant 60 : index
    %299 = memref.load %arg2[%c60] : memref<98xf32, #tpu.memory_space<smem>>
    %300 = vector.broadcast %299 : f32 to vector<1x256xf32>
    %301 = arith.mulf %60, %300 : vector<1x256xf32>
    %c61 = arith.constant 61 : index
    %302 = memref.load %arg2[%c61] : memref<98xf32, #tpu.memory_space<smem>>
    %303 = vector.broadcast %302 : f32 to vector<1x256xf32>
    %304 = arith.mulf %65, %303 : vector<1x256xf32>
    %c62 = arith.constant 62 : index
    %305 = memref.load %arg2[%c62] : memref<98xf32, #tpu.memory_space<smem>>
    %306 = vector.broadcast %305 : f32 to vector<1x256xf32>
    %307 = arith.mulf %70, %306 : vector<1x256xf32>
    %308 = arith.addf %289, %292 : vector<1x256xf32>
    %309 = arith.addf %295, %298 : vector<1x256xf32>
    %310 = arith.addf %301, %304 : vector<1x256xf32>
    %311 = arith.addf %308, %309 : vector<1x256xf32>
    %312 = arith.addf %310, %307 : vector<1x256xf32>
    %313 = arith.addf %311, %312 : vector<1x256xf32>
    %c63 = arith.constant 63 : index
    %314 = memref.load %arg2[%c63] : memref<98xf32, #tpu.memory_space<smem>>
    %315 = vector.broadcast %314 : f32 to vector<1x256xf32>
    %316 = arith.mulf %45, %315 : vector<1x256xf32>
    %c64 = arith.constant 64 : index
    %317 = memref.load %arg2[%c64] : memref<98xf32, #tpu.memory_space<smem>>
    %318 = vector.broadcast %317 : f32 to vector<1x256xf32>
    %319 = arith.mulf %50, %318 : vector<1x256xf32>
    %c65 = arith.constant 65 : index
    %320 = memref.load %arg2[%c65] : memref<98xf32, #tpu.memory_space<smem>>
    %321 = vector.broadcast %320 : f32 to vector<1x256xf32>
    %322 = arith.mulf %55, %321 : vector<1x256xf32>
    %c66 = arith.constant 66 : index
    %323 = memref.load %arg2[%c66] : memref<98xf32, #tpu.memory_space<smem>>
    %324 = vector.broadcast %323 : f32 to vector<1x256xf32>
    %325 = arith.mulf %7, %324 : vector<1x256xf32>
    %c67 = arith.constant 67 : index
    %326 = memref.load %arg2[%c67] : memref<98xf32, #tpu.memory_space<smem>>
    %327 = vector.broadcast %326 : f32 to vector<1x256xf32>
    %328 = arith.mulf %60, %327 : vector<1x256xf32>
    %c68 = arith.constant 68 : index
    %329 = memref.load %arg2[%c68] : memref<98xf32, #tpu.memory_space<smem>>
    %330 = vector.broadcast %329 : f32 to vector<1x256xf32>
    %331 = arith.mulf %65, %330 : vector<1x256xf32>
    %c69 = arith.constant 69 : index
    %332 = memref.load %arg2[%c69] : memref<98xf32, #tpu.memory_space<smem>>
    %333 = vector.broadcast %332 : f32 to vector<1x256xf32>
    %334 = arith.mulf %70, %333 : vector<1x256xf32>
    %335 = arith.addf %316, %319 : vector<1x256xf32>
    %336 = arith.addf %322, %325 : vector<1x256xf32>
    %337 = arith.addf %328, %331 : vector<1x256xf32>
    %338 = arith.addf %335, %336 : vector<1x256xf32>
    %339 = arith.addf %337, %334 : vector<1x256xf32>
    %340 = arith.addf %338, %339 : vector<1x256xf32>
    %c70 = arith.constant 70 : index
    %341 = memref.load %arg2[%c70] : memref<98xf32, #tpu.memory_space<smem>>
    %342 = vector.broadcast %341 : f32 to vector<1x256xf32>
    %343 = arith.mulf %45, %342 : vector<1x256xf32>
    %c71 = arith.constant 71 : index
    %344 = memref.load %arg2[%c71] : memref<98xf32, #tpu.memory_space<smem>>
    %345 = vector.broadcast %344 : f32 to vector<1x256xf32>
    %346 = arith.mulf %50, %345 : vector<1x256xf32>
    %c72 = arith.constant 72 : index
    %347 = memref.load %arg2[%c72] : memref<98xf32, #tpu.memory_space<smem>>
    %348 = vector.broadcast %347 : f32 to vector<1x256xf32>
    %349 = arith.mulf %55, %348 : vector<1x256xf32>
    %c73 = arith.constant 73 : index
    %350 = memref.load %arg2[%c73] : memref<98xf32, #tpu.memory_space<smem>>
    %351 = vector.broadcast %350 : f32 to vector<1x256xf32>
    %352 = arith.mulf %7, %351 : vector<1x256xf32>
    %c74 = arith.constant 74 : index
    %353 = memref.load %arg2[%c74] : memref<98xf32, #tpu.memory_space<smem>>
    %354 = vector.broadcast %353 : f32 to vector<1x256xf32>
    %355 = arith.mulf %60, %354 : vector<1x256xf32>
    %c75 = arith.constant 75 : index
    %356 = memref.load %arg2[%c75] : memref<98xf32, #tpu.memory_space<smem>>
    %357 = vector.broadcast %356 : f32 to vector<1x256xf32>
    %358 = arith.mulf %65, %357 : vector<1x256xf32>
    %c76 = arith.constant 76 : index
    %359 = memref.load %arg2[%c76] : memref<98xf32, #tpu.memory_space<smem>>
    %360 = vector.broadcast %359 : f32 to vector<1x256xf32>
    %361 = arith.mulf %70, %360 : vector<1x256xf32>
    %362 = arith.addf %343, %346 : vector<1x256xf32>
    %363 = arith.addf %349, %352 : vector<1x256xf32>
    %364 = arith.addf %355, %358 : vector<1x256xf32>
    %365 = arith.addf %362, %363 : vector<1x256xf32>
    %366 = arith.addf %364, %361 : vector<1x256xf32>
    %367 = arith.addf %365, %366 : vector<1x256xf32>
    %c77 = arith.constant 77 : index
    %368 = memref.load %arg2[%c77] : memref<98xf32, #tpu.memory_space<smem>>
    %369 = vector.broadcast %368 : f32 to vector<1x256xf32>
    %370 = arith.mulf %45, %369 : vector<1x256xf32>
    %c78 = arith.constant 78 : index
    %371 = memref.load %arg2[%c78] : memref<98xf32, #tpu.memory_space<smem>>
    %372 = vector.broadcast %371 : f32 to vector<1x256xf32>
    %373 = arith.mulf %50, %372 : vector<1x256xf32>
    %c79 = arith.constant 79 : index
    %374 = memref.load %arg2[%c79] : memref<98xf32, #tpu.memory_space<smem>>
    %375 = vector.broadcast %374 : f32 to vector<1x256xf32>
    %376 = arith.mulf %55, %375 : vector<1x256xf32>
    %c80 = arith.constant 80 : index
    %377 = memref.load %arg2[%c80] : memref<98xf32, #tpu.memory_space<smem>>
    %378 = vector.broadcast %377 : f32 to vector<1x256xf32>
    %379 = arith.mulf %7, %378 : vector<1x256xf32>
    %c81 = arith.constant 81 : index
    %380 = memref.load %arg2[%c81] : memref<98xf32, #tpu.memory_space<smem>>
    %381 = vector.broadcast %380 : f32 to vector<1x256xf32>
    %382 = arith.mulf %60, %381 : vector<1x256xf32>
    %c82 = arith.constant 82 : index
    %383 = memref.load %arg2[%c82] : memref<98xf32, #tpu.memory_space<smem>>
    %384 = vector.broadcast %383 : f32 to vector<1x256xf32>
    %385 = arith.mulf %65, %384 : vector<1x256xf32>
    %c83 = arith.constant 83 : index
    %386 = memref.load %arg2[%c83] : memref<98xf32, #tpu.memory_space<smem>>
    %387 = vector.broadcast %386 : f32 to vector<1x256xf32>
    %388 = arith.mulf %70, %387 : vector<1x256xf32>
    %389 = arith.addf %370, %373 : vector<1x256xf32>
    %390 = arith.addf %376, %379 : vector<1x256xf32>
    %391 = arith.addf %382, %385 : vector<1x256xf32>
    %392 = arith.addf %389, %390 : vector<1x256xf32>
    %393 = arith.addf %391, %388 : vector<1x256xf32>
    %394 = arith.addf %392, %393 : vector<1x256xf32>
    %c84 = arith.constant 84 : index
    %395 = memref.load %arg2[%c84] : memref<98xf32, #tpu.memory_space<smem>>
    %396 = vector.broadcast %395 : f32 to vector<1x256xf32>
    %397 = arith.mulf %45, %396 : vector<1x256xf32>
    %c85 = arith.constant 85 : index
    %398 = memref.load %arg2[%c85] : memref<98xf32, #tpu.memory_space<smem>>
    %399 = vector.broadcast %398 : f32 to vector<1x256xf32>
    %400 = arith.mulf %50, %399 : vector<1x256xf32>
    %c86 = arith.constant 86 : index
    %401 = memref.load %arg2[%c86] : memref<98xf32, #tpu.memory_space<smem>>
    %402 = vector.broadcast %401 : f32 to vector<1x256xf32>
    %403 = arith.mulf %55, %402 : vector<1x256xf32>
    %c87 = arith.constant 87 : index
    %404 = memref.load %arg2[%c87] : memref<98xf32, #tpu.memory_space<smem>>
    %405 = vector.broadcast %404 : f32 to vector<1x256xf32>
    %406 = arith.mulf %7, %405 : vector<1x256xf32>
    %c88 = arith.constant 88 : index
    %407 = memref.load %arg2[%c88] : memref<98xf32, #tpu.memory_space<smem>>
    %408 = vector.broadcast %407 : f32 to vector<1x256xf32>
    %409 = arith.mulf %60, %408 : vector<1x256xf32>
    %c89 = arith.constant 89 : index
    %410 = memref.load %arg2[%c89] : memref<98xf32, #tpu.memory_space<smem>>
    %411 = vector.broadcast %410 : f32 to vector<1x256xf32>
    %412 = arith.mulf %65, %411 : vector<1x256xf32>
    %c90 = arith.constant 90 : index
    %413 = memref.load %arg2[%c90] : memref<98xf32, #tpu.memory_space<smem>>
    %414 = vector.broadcast %413 : f32 to vector<1x256xf32>
    %415 = arith.mulf %70, %414 : vector<1x256xf32>
    %416 = arith.addf %397, %400 : vector<1x256xf32>
    %417 = arith.addf %403, %406 : vector<1x256xf32>
    %418 = arith.addf %409, %412 : vector<1x256xf32>
    %419 = arith.addf %416, %417 : vector<1x256xf32>
    %420 = arith.addf %418, %415 : vector<1x256xf32>
    %421 = arith.addf %419, %420 : vector<1x256xf32>
    %c91 = arith.constant 91 : index
    %422 = memref.load %arg2[%c91] : memref<98xf32, #tpu.memory_space<smem>>
    %423 = vector.broadcast %422 : f32 to vector<1x256xf32>
    %424 = arith.mulf %45, %423 : vector<1x256xf32>
    %c92 = arith.constant 92 : index
    %425 = memref.load %arg2[%c92] : memref<98xf32, #tpu.memory_space<smem>>
    %426 = vector.broadcast %425 : f32 to vector<1x256xf32>
    %427 = arith.mulf %50, %426 : vector<1x256xf32>
    %c93 = arith.constant 93 : index
    %428 = memref.load %arg2[%c93] : memref<98xf32, #tpu.memory_space<smem>>
    %429 = vector.broadcast %428 : f32 to vector<1x256xf32>
    %430 = arith.mulf %55, %429 : vector<1x256xf32>
    %c94 = arith.constant 94 : index
    %431 = memref.load %arg2[%c94] : memref<98xf32, #tpu.memory_space<smem>>
    %432 = vector.broadcast %431 : f32 to vector<1x256xf32>
    %433 = arith.mulf %7, %432 : vector<1x256xf32>
    %c95 = arith.constant 95 : index
    %434 = memref.load %arg2[%c95] : memref<98xf32, #tpu.memory_space<smem>>
    %435 = vector.broadcast %434 : f32 to vector<1x256xf32>
    %436 = arith.mulf %60, %435 : vector<1x256xf32>
    %c96 = arith.constant 96 : index
    %437 = memref.load %arg2[%c96] : memref<98xf32, #tpu.memory_space<smem>>
    %438 = vector.broadcast %437 : f32 to vector<1x256xf32>
    %439 = arith.mulf %65, %438 : vector<1x256xf32>
    %c97 = arith.constant 97 : index
    %440 = memref.load %arg2[%c97] : memref<98xf32, #tpu.memory_space<smem>>
    %441 = vector.broadcast %440 : f32 to vector<1x256xf32>
    %442 = arith.mulf %70, %441 : vector<1x256xf32>
    %443 = arith.addf %424, %427 : vector<1x256xf32>
    %444 = arith.addf %430, %433 : vector<1x256xf32>
    %445 = arith.addf %436, %439 : vector<1x256xf32>
    %446 = arith.addf %443, %444 : vector<1x256xf32>
    %447 = arith.addf %445, %442 : vector<1x256xf32>
    %448 = arith.addf %446, %447 : vector<1x256xf32>
    %c48_i32 = arith.constant 48 : i32
    %449 = tpu.dynamic_rotate %97 by %c48_i32 dim 1 : vector<1x256xf32>, i32 -> vector<1x256xf32>
    %c48_i32_33 = arith.constant 48 : i32
    %450 = vector.broadcast %c48_i32_33 : i32 to vector<1x256xi32>
    %451 = arith.cmpi sge, %8, %450 : vector<1x256xi32>
    %cst_34 = arith.constant 0.000000e+00 : f32
    %452 = vector.broadcast %cst_34 : f32 to vector<1x256xf32>
    %453 = arith.select %451, %449, %452 : vector<1x256xi1>, vector<1x256xf32>
    %c32_i32 = arith.constant 32 : i32
    %454 = tpu.dynamic_rotate %124 by %c32_i32 dim 1 : vector<1x256xf32>, i32 -> vector<1x256xf32>
    %c32_i32_35 = arith.constant 32 : i32
    %455 = vector.broadcast %c32_i32_35 : i32 to vector<1x256xi32>
    %456 = arith.cmpi sge, %8, %455 : vector<1x256xi32>
    %cst_36 = arith.constant 0.000000e+00 : f32
    %457 = vector.broadcast %cst_36 : f32 to vector<1x256xf32>
    %458 = arith.select %456, %454, %457 : vector<1x256xi1>, vector<1x256xf32>
    %c16_i32 = arith.constant 16 : i32
    %459 = tpu.dynamic_rotate %151 by %c16_i32 dim 1 : vector<1x256xf32>, i32 -> vector<1x256xf32>
    %c16_i32_37 = arith.constant 16 : i32
    %460 = vector.broadcast %c16_i32_37 : i32 to vector<1x256xi32>
    %461 = arith.cmpi sge, %8, %460 : vector<1x256xi32>
    %cst_38 = arith.constant 0.000000e+00 : f32
    %462 = vector.broadcast %cst_38 : f32 to vector<1x256xf32>
    %463 = arith.select %461, %459, %462 : vector<1x256xi1>, vector<1x256xf32>
    %c240_i32 = arith.constant 240 : i32
    %464 = tpu.dynamic_rotate %205 by %c240_i32 dim 1 : vector<1x256xf32>, i32 -> vector<1x256xf32>
    %c240_i32_39 = arith.constant 240 : i32
    %465 = vector.broadcast %c240_i32_39 : i32 to vector<1x256xi32>
    %466 = arith.cmpi slt, %8, %465 : vector<1x256xi32>
    %cst_40 = arith.constant 0.000000e+00 : f32
    %467 = vector.broadcast %cst_40 : f32 to vector<1x256xf32>
    %468 = arith.select %466, %464, %467 : vector<1x256xi1>, vector<1x256xf32>
    %c224_i32 = arith.constant 224 : i32
    %469 = tpu.dynamic_rotate %232 by %c224_i32 dim 1 : vector<1x256xf32>, i32 -> vector<1x256xf32>
    %c224_i32_41 = arith.constant 224 : i32
    %470 = vector.broadcast %c224_i32_41 : i32 to vector<1x256xi32>
    %471 = arith.cmpi slt, %8, %470 : vector<1x256xi32>
    %cst_42 = arith.constant 0.000000e+00 : f32
    %472 = vector.broadcast %cst_42 : f32 to vector<1x256xf32>
    %473 = arith.select %471, %469, %472 : vector<1x256xi1>, vector<1x256xf32>
    %c208_i32 = arith.constant 208 : i32
    %474 = tpu.dynamic_rotate %259 by %c208_i32 dim 1 : vector<1x256xf32>, i32 -> vector<1x256xf32>
    %c208_i32_43 = arith.constant 208 : i32
    %475 = vector.broadcast %c208_i32_43 : i32 to vector<1x256xi32>
    %476 = arith.cmpi slt, %8, %475 : vector<1x256xi32>
    %cst_44 = arith.constant 0.000000e+00 : f32
    %477 = vector.broadcast %cst_44 : f32 to vector<1x256xf32>
    %478 = arith.select %476, %474, %477 : vector<1x256xi1>, vector<1x256xf32>
    %c48_i32_45 = arith.constant 48 : i32
    %479 = tpu.dynamic_rotate %286 by %c48_i32_45 dim 1 : vector<1x256xf32>, i32 -> vector<1x256xf32>
    %c48_i32_46 = arith.constant 48 : i32
    %480 = vector.broadcast %c48_i32_46 : i32 to vector<1x256xi32>
    %481 = arith.cmpi sge, %8, %480 : vector<1x256xi32>
    %cst_47 = arith.constant 0.000000e+00 : f32
    %482 = vector.broadcast %cst_47 : f32 to vector<1x256xf32>
    %483 = arith.select %481, %479, %482 : vector<1x256xi1>, vector<1x256xf32>
    %c32_i32_48 = arith.constant 32 : i32
    %484 = tpu.dynamic_rotate %313 by %c32_i32_48 dim 1 : vector<1x256xf32>, i32 -> vector<1x256xf32>
    %c32_i32_49 = arith.constant 32 : i32
    %485 = vector.broadcast %c32_i32_49 : i32 to vector<1x256xi32>
    %486 = arith.cmpi sge, %8, %485 : vector<1x256xi32>
    %cst_50 = arith.constant 0.000000e+00 : f32
    %487 = vector.broadcast %cst_50 : f32 to vector<1x256xf32>
    %488 = arith.select %486, %484, %487 : vector<1x256xi1>, vector<1x256xf32>
    %c16_i32_51 = arith.constant 16 : i32
    %489 = tpu.dynamic_rotate %340 by %c16_i32_51 dim 1 : vector<1x256xf32>, i32 -> vector<1x256xf32>
    %c16_i32_52 = arith.constant 16 : i32
    %490 = vector.broadcast %c16_i32_52 : i32 to vector<1x256xi32>
    %491 = arith.cmpi sge, %8, %490 : vector<1x256xi32>
    %cst_53 = arith.constant 0.000000e+00 : f32
    %492 = vector.broadcast %cst_53 : f32 to vector<1x256xf32>
    %493 = arith.select %491, %489, %492 : vector<1x256xi1>, vector<1x256xf32>
    %c240_i32_54 = arith.constant 240 : i32
    %494 = tpu.dynamic_rotate %394 by %c240_i32_54 dim 1 : vector<1x256xf32>, i32 -> vector<1x256xf32>
    %c240_i32_55 = arith.constant 240 : i32
    %495 = vector.broadcast %c240_i32_55 : i32 to vector<1x256xi32>
    %496 = arith.cmpi slt, %8, %495 : vector<1x256xi32>
    %cst_56 = arith.constant 0.000000e+00 : f32
    %497 = vector.broadcast %cst_56 : f32 to vector<1x256xf32>
    %498 = arith.select %496, %494, %497 : vector<1x256xi1>, vector<1x256xf32>
    %c224_i32_57 = arith.constant 224 : i32
    %499 = tpu.dynamic_rotate %421 by %c224_i32_57 dim 1 : vector<1x256xf32>, i32 -> vector<1x256xf32>
    %c224_i32_58 = arith.constant 224 : i32
    %500 = vector.broadcast %c224_i32_58 : i32 to vector<1x256xi32>
    %501 = arith.cmpi slt, %8, %500 : vector<1x256xi32>
    %cst_59 = arith.constant 0.000000e+00 : f32
    %502 = vector.broadcast %cst_59 : f32 to vector<1x256xf32>
    %503 = arith.select %501, %499, %502 : vector<1x256xi1>, vector<1x256xf32>
    %c208_i32_60 = arith.constant 208 : i32
    %504 = tpu.dynamic_rotate %448 by %c208_i32_60 dim 1 : vector<1x256xf32>, i32 -> vector<1x256xf32>
    %c208_i32_61 = arith.constant 208 : i32
    %505 = vector.broadcast %c208_i32_61 : i32 to vector<1x256xi32>
    %506 = arith.cmpi slt, %8, %505 : vector<1x256xi32>
    %cst_62 = arith.constant 0.000000e+00 : f32
    %507 = vector.broadcast %cst_62 : f32 to vector<1x256xf32>
    %508 = arith.select %506, %504, %507 : vector<1x256xi1>, vector<1x256xf32>
    %509 = arith.addf %453, %458 : vector<1x256xf32>
    %510 = arith.addf %463, %178 : vector<1x256xf32>
    %511 = arith.addf %468, %473 : vector<1x256xf32>
    %512 = arith.addf %478, %483 : vector<1x256xf32>
    %513 = arith.addf %488, %493 : vector<1x256xf32>
    %514 = arith.addf %367, %498 : vector<1x256xf32>
    %515 = arith.addf %503, %508 : vector<1x256xf32>
    %516 = arith.addf %509, %510 : vector<1x256xf32>
    %517 = arith.addf %511, %512 : vector<1x256xf32>
    %518 = arith.addf %513, %514 : vector<1x256xf32>
    %519 = arith.addf %516, %517 : vector<1x256xf32>
    %520 = arith.addf %518, %515 : vector<1x256xf32>
    %521 = arith.addf %519, %520 : vector<1x256xf32>
    %cst_63 = arith.constant 0.000000e+00 : f32
    %522 = vector.broadcast %cst_63 : f32 to vector<1x256xf32>
    %523 = arith.subf %522, %521 : vector<1x256xf32>
    %524 = math.exp %523 : vector<1x256xf32>
    %cst_64 = arith.constant 1.000000e+00 : f32
    %525 = vector.broadcast %cst_64 : f32 to vector<1x256xf32>
    %526 = arith.addf %525, %524 : vector<1x256xf32>
    %527 = tpu.reciprocal %526 : vector<1x256xf32> -> vector<1x256xf32>
    %528 = vector.broadcast %527 : vector<1x256xf32> to vector<4x256xf32>
    %529 = arith.mulf %528, %1 : vector<4x256xf32>
    %c0_65 = arith.constant 0 : index
    %c0_66 = arith.constant 0 : index
    %c0_67 = arith.constant 0 : index
    %530 = vector.load %arg3[%c0_65, %c0_66, %c0_67] : memref<1x4x256xf32, #tpu.memory_space<vmem>>, vector<1x4x256xf32>
    %531 = vector.shape_cast %530 : vector<1x4x256xf32> to vector<4x256xf32>
    %532 = vector.shape_cast %529 : vector<4x256xf32> to vector<1x4x256xf32>
    tpu.vector_store %arg3[%c0_65, %c0_66, %c0_67], %532 {strides = array<i32>} : memref<1x4x256xf32, #tpu.memory_space<vmem>>, vector<1x4x256xf32>,
    return
  }
  func.func @transform_0(%arg0: i32) -> (i32, i32, i32) {
    %c0_i32 = arith.constant 0 : i32
    %c0_i32_0 = arith.constant 0 : i32
    %c0_i32_1 = arith.constant 0 : i32
    return %arg0, %c0_i32, %c0_i32_0 : i32, i32, i32
  }
  func.func @transform_1(%arg0: i32) -> i32 {
    %c0_i32 = arith.constant 0 : i32
    %c0_i32_0 = arith.constant 0 : i32
    return %c0_i32 : i32
  }
  func.func @transform_2(%arg0: i32) -> (i32, i32, i32) {
    %c0_i32 = arith.constant 0 : i32
    %c0_i32_0 = arith.constant 0 : i32
    %c0_i32_1 = arith.constant 0 : i32
    return %arg0, %c0_i32, %c0_i32_0 : i32, i32, i32
  }
}

</mosaic_0001>

<bundles_post_ra>
// kernel: tpu_custom_call.1
= control target key start
LH: loop header
LB: loop body
LE: loop exit
PB: predicated region body
PF: predicated region fallthrough
CT: control target
= control target key end

     0   :  { %s2984_s0 = inlined_call_operand.hbm [shape: f32[2,4,256], index: 0, kind: input, shape index: {}]   ;;  %s2985_s1 = inlined_call_operand.vmem [shape: f32[98], index: 1, kind: input, shape index: {}]   ;;  %s2986_s2 = inlined_call_operand.hbm [shape: f32[2,4,256], index: 2, kind: output, shape index: {}]  }
   0x1   :  { %3098 = sst [smem:[#allocation96_spill]] %s2984_s0 }
   0x2   :  { %3099 = sst [smem:[#allocation97_spill]] %s2985_s1 }
   0x3   :  { %3100 = sst [smem:[#allocation98_spill]] %s2986_s2 }
   0x4   :  { %7 = vsyncpa [#allocation3], 0 }
   0x5   :  { %9 = vsyncpa [#allocation3 + $0x1], 0 }
   0x6   :  { %10 = vsyncpa [#allocation5], 0 }
   0x7   :  { %11 = vsyncpa [#allocation4], 0 }
   0x8   :  { %13 = vsyncpa [#allocation4 + $0x1], 0  ;;  %s1487_s9 = smov 0   ;;  %s1489_s10 = smov 0  }
   0x9   :  { %s1491_s11 = smov 0   ;;  %s1493_s12 = smov 0  }
   0xa LB: > { %3101 = sst [smem:[#allocation11_spill]] %s1443_s9  ;;  %s1508_s13 = sadd.s32 4294967295, %s1455_s12   ;;  %s1455_s12 = sphi %s1493_s12, %s3432_s12   ;;  %s1451_s11 = sphi %s1491_s11, %s3435_s11   ;;  %s1447_s10 = sphi %s1489_s10, %s3434_s10   ;;  %s1443_s9 = sphi %s1487_s9, %s3433_s9  }
   0xb   : > { %3102 = sst [smem:[#allocation12_spill]] %s1447_s10  ;;  %s1150_s14 = sadd.s32 4294967294, %s1455_s12  }
   0xc   : > { %3103 = sst [smem:[#allocation13_spill]] %s1451_s11  ;;  %p39_p0 = scmp.ne.s32.totalorder %s1447_s10, %s1443_s9 }
   0xd   : > { %3104 = sst [smem:[#allocation14_spill]] %s1455_s12  ;;  %p2987_p1 = scmp.eq.s32.totalorder %s1508_s13, 0 }
   0xe   : > { %3105 = sst [smem:[#allocation15_spill]] %s1508_s13  ;;  %p90_p3 = scmp.eq.s32.totalorder %s1150_s14, 1 }
   0xf   : > { %p1517_p4 = por %p2987_p1, %p39_p0  ;;  %p1151_p5 = scmp.ge.s32.totalorder %s1455_s12, 1 }
  0x10   : > { %p1522_p6 = por %p90_p3, %p39_p0  ;;  %p97_p7 = scmp.lt.s32.totalorder %s1455_s12, 3 }
  0x11   : > { %s3106_s15 = scalar_select %p1517_p4, 1, 0 }
  0x12   : > { %s3107_s16 = scalar_select %p1522_p6, 1, 0 }
  0x13   : > { %s3109_s1 = sld [smem:[#allocation97_spill]]  ;;  %p1530_p8 = pnand %p1151_p5, %p97_p7 }
  0x14   : > { %3108 = sst [smem:[#allocation16_spill]] %s3107_s16  ;;  %s1538_s21 = sadd.s32 1, %s1455_s12  }
  0x15   : > { %s3110_s20 = scalar_select %p1530_p8, 1, 0 }
  0x16   : > { %p1273_p10 = pneg %p1530_p8  ;;  %3111 = sst [smem:[#allocation17_spill]] %s1538_s21 }
  0x17   : > { %s23_s23 = ssub.s32 %s1455_s12, %s1538_s21  ;;  %s26_s25 = sadd.s32 1, %s1451_s11 }
  0x18   : > { %p1542_p11 = pnand %p1273_p10, %p2987_p1  ;;  %p1548_p12 = scmp.eq.s32.totalorder %s23_s23, 0 }
  0x19   : > { %s110_s19 = sshll.u32 %s3109_s1, 4  ;;  %p33_p13 = scmp.ne.s32.totalorder %s1451_s11, %s1447_s10  ;;  %s111_s19 = int_to_ptr.vmem [resolvable:$true] %s110_s19 }
  0x1a   : > { %s1344_s26 = scalar_lea.vmem %s111_s19, 16  ;;  %p1346_p3 = pneg %p1542_p11 }
  0x1b   : > { %p1345_p0 = scmp.ne.s32.totalorder %s111_s19, %s1344_s26  ;;  %p1352_p9 = scmp.lt.s32.totalorder %s111_s19, %s111_s19 }
  0x1c   : > { %p1353_p2 = scmp.lt.s32.totalorder %s1344_s26, %s1344_s26 }
  0x1d   : > { %p1347_p5 = pnand %p1346_p3, %p1345_p0 }
  0x1e   : > { %p1354_p10 = por %p1353_p2, %p1352_p9 }
  0x1f   : > { %p1348_p7 = pneg %p1347_p5 }
  0x21   : > { %p1355_p1 = pnand %p1354_p10, %p1348_p7 }
  0x23   : > { %1358 = shalt.err (!%p1355_p1)
}
  0x24   : > { %s1457_s27 = smov [#allocation6]   ;;  %p34_p2 = scmp.eq.s32.totalorder %s1455_s12, 0 }
  0x25   : > { %1276 = dma.vmem_to_smem (!%p1542_p11), %s111_s19, 16, %s1457_s27, [#allocation5]  }
  0x26   : > { %s1562_s28 = scalar_select %p1548_p12, %s1451_s11, %s26_s25  }
  0x27   : > { %p3115_p1 = scmp.eq.s32.totalorder %s1508_s13, 1  ;;  %p1286_p0 = scmp.lt.s32.totalorder %s1455_s12, 2 }
  0x28   : > { %3114 = sst [smem:[#allocation18_spill]] %s1562_s28  ;;  %s121_s30 = sand.u32 1, %s1451_s11  }
  0x29   : > { %p1570_p9 = por %p3115_p1, %p33_p13  ;;  %p35_p3 = por %p34_p2, %p33_p13 }
  0x2a   : > { %s1154_s3 = sshll.u32 %s121_s30, 3  ;;  %s1263_s4 = sshll.u32 %s1455_s12, 7 }
  0x2b   : > { %s3116_s29 = scalar_select %p1570_p9, 1, 0 }
  0x2c   : > { %s3118_s0 = sld [smem:[#allocation96_spill]]  ;;  %s125_s8 = scalar_lea.vmem [#allocation2], %s1154_s3 }
  0x2d   : > { %3117 = sst [smem:[#allocation19_spill]] %s3116_s29  ;;  %s133_s14 = sshll.u32 %s125_s8, 4  ;;  %s134_s14 = int_to_ptr.vmem [resolvable:$true] %s133_s14 }
  0x2e   : > { %p1585_p11 = pnand %p1286_p0, %p35_p3  ;;  %s122_s18 = scalar_lea.sflag [#allocation3], %s121_s30 }
  0x30   : > { %p1361_p13 = pneg %p1585_p11 }
  0x32   : > { %s1583_s7 = scalar_lea.hbm %s3118_s0, %s1263_s4  ;;  %s1364_s24 = scalar_lea.hbm %s3118_s0, 256 }
  0x33   : > { %s1359_s19 = scalar_lea.hbm %s1583_s7, 128  ;;  %p1365_p10 = scmp.lt.s32.totalorder %s1583_s7, %s3118_s0 }
  0x34   : > { %p1360_p12 = scmp.ne.s32.totalorder %s1583_s7, %s1359_s19  ;;  %p1366_p2 = scmp.lt.s32.totalorder %s1364_s24, %s1359_s19 }
  0x36   : > { %p1362_p5 = pnand %p1361_p13, %p1360_p12  ;;  %p1367_p1 = por %p1366_p2, %p1365_p10 }
  0x38   : > { %p1363_p7 = pneg %p1362_p5 }
  0x3a   : > { %p1368_p0 = pnand %p1367_p1, %p1363_p7 }
  0x3c   : > { %1371 = shalt.err (!%p1368_p0)
}
  0x3d   : > { %s1372_s27 = scalar_lea.vmem %s134_s14, 128  ;;  %s1458_s30 = smov [#allocation2]  }
  0x3e   : > { %p1373_p3 = scmp.ne.s32.totalorder %s134_s14, %s1372_s27  ;;  %s1377_s3 = sshll.u32 %s1458_s30, 4  ;;  %s1378_s3 = int_to_ptr.vmem [resolvable:$false] %s1377_s3 }
  0x3f   : > { %s1379_s4 = scalar_lea.vmem %s1378_s3, 256  ;;  %p1380_p12 = scmp.lt.s32.totalorder %s134_s14, %s1378_s3 }
  0x40   : > { %p1375_p6 = pnand %p1373_p3, %p1361_p13  ;;  %p1381_p5 = scmp.lt.s32.totalorder %s1379_s4, %s1372_s27 }
  0x42   : > { %p1376_p9 = pneg %p1375_p6  ;;  %p1382_p4 = por %p1381_p5, %p1380_p12 }
  0x44   : > { %p1383_p8 = pnand %p1382_p4, %p1376_p9 }
  0x46   : > { %1386 = shalt.err (!%p1383_p8)
}
  0x47   : > { %1280 = dma.hbm_to_vmem [thread:$0]  (!%p1585_p11), %s1583_s7, 128, %s134_s14, %s122_s18  }
  0x48   : > { %p3120_p7 = scmp.ne.s32.totalorder %s3110_s20, 0 }
  0x4a   : > { %142 = sbr.rel (%p3120_p7) target bundleno = 533 (0x215), region = 28 }
  0x4f   : > { %s1606_s5 = sand.u32 1, %s1447_s10   ;;  %p3123_p4 = scmp.ne.s32.totalorder %s3106_s15, 0 }
  0x50   : > { %3121 = sst [smem:[#allocation20_spill]] %s1606_s5  ;;  %s2991_s6 = sshll.u32 %s1606_s5, 3 }
  0x51   : > { %s145_s8 = scalar_lea.sflag [#allocation3], %s1606_s5  ;;  %s1612_s19 = scalar_lea.vmem [#allocation2], %s2991_s6 }
  0x52   : > { %3122 = sst [smem:[#allocation21_spill]] %s1612_s19 }
  0x53   : > { %1430 = dma.done.wait (%p3123_p4), %s145_s8, 128  }
  0x54   : > { %1432 = vsyncadd (%p3123_p4), %s145_s8, 4294967168  ;;  %p3124_p6 = scmp.eq.s32.totalorder %s1508_s13, 0 }
  0x56   : > { %1434 = dma.done.wait (%p3124_p6), [#allocation5], 16   ;;  %p3125_p8 = pmov %p3124_p6 }
  0x58   : > { %1436 = vsyncadd (%p3125_p8), [#allocation5], 4294967280 }
  0x59   : > { %157 = sfence }
  0x5a   : > { %v174_v0 = vld [vmem:[%s1612_s19] sm:$0xff]  ;;  %vm178_vm0 = vcmask 1043456   ;;  %s1459_s15 = smov 2   ;;  %s1460_s20 = smov 3   ;;  %v3071_v32 = vlaneseq }
  0x5b   : > { %v179_v1 = vsel %vm178_vm0, %v174_v0, -inf  ;;  %v1623_v2 = vcombine.high %v174_v0, %v174_v0  ;;  %v193_v6 = vsel %vm178_vm0, %v174_v0, 0.0  ;;  %s1461_s7 = smov 1   ;;  %s1462_s14 = smov 127  }
  0x5c   : > { %v180_v3 = vrot.slane %v179_v1, 4  ;;  %v194_v12 = vrot.slane %v193_v6, 4  ;;  %s1463_s17 = smov 126   ;;  %s1655_s18 = sld [smem:[#allocation6 + $0x1]]  ;;  %v1762_v33 = vand.u32 127, %v3071_v32 }
  0x5d   : > { %3126 = vst [vmem:[#allocation22_spill] sm:$0xff] %v1623_v2  ;;  %v186_v4 = vsel %vm178_vm0, %v1623_v2, -inf  ;;  %v200_v5 = vsel %vm178_vm0, %v1623_v2, 0.0  ;;  %s1657_s22 = sld [smem:[#allocation6 + $0x2]]  ;;  %s1464_s25 = smov 125  }
  0x5e   : > { %v181_v7 = vmax.f32 %v179_v1, %v180_v3  ;;  %v187_v8 = vrot.slane %v186_v4, 4  ;;  %v201_v11 = vrot.slane %v200_v5, 4  ;;  %v195_v18 = vadd.f32 %v194_v12, %v193_v6  ;;  %s1659_s23 = sld [smem:[#allocation6 + $0x3]] }
  0x5f   : > { %s1661_s24 = sld [smem:[#allocation6 + $0x8]]  ;;  %v1773_v34 = vadd.s32 128, %v1762_v33  ;;  %v1785_v36 = vand.u32 15, %v1762_v33  ;;  %vm229_vm1 = vcmp.lt.s32.totalorder %v1762_v33, 2  ;;  %vm240_vm4 = vcmp.lt.s32.totalorder %v1762_v33, 1 }
  0x60   : > { %v182_v9 = vrot.slane %v181_v7, 2  ;;  %v188_v10 = vmax.f32 %v186_v4, %v187_v8  ;;  %v202_v17 = vadd.f32 %v201_v11, %v200_v5  ;;  %v196_v23 = vrot.slane %v195_v18, 2  ;;  %s1665_s26 = sld [smem:[#allocation6 + $0x9]] }
  0x61   : > { %s1667_s27 = sld [smem:[#allocation6 + $0x4]]  ;;  %3177 = vst [vmem:[#allocation73_spill] sm:$0xff] %v1773_v34  ;;  %v1788_v37 = vand.u32 15, %v1773_v34  ;;  %vm232_vm2 = vcmp.ge.s32.totalorder %v1785_v36, 2  ;;  %vm243_vm5 = vcmp.ge.s32.totalorder %v1785_v36, 1  ;;  %vm251_vm7 = vcmp.lt.s32.totalorder %v1762_v33, 127 }
  0x62   : > { %v183_v13 = vmax.f32 %v181_v7, %v182_v9  ;;  %v189_v14 = vrot.slane %v188_v10, 2  ;;  %v203_v22 = vrot.slane %v202_v17, 2  ;;  %v197_v25 = vadd.f32 %v196_v23, %v195_v18  ;;  %3131 = sst [smem:[#allocation27_spill]] %s1655_s18 }
  0x63   : > { %3132 = sst [smem:[#allocation28_spill]] %s1657_s22  ;;  %v333_v38 = vstv %s1655_s18  ;;  %v337_v40 = vstv %s1657_s22  ;;  %vm233_vm3 = vcmp.ge.s32.totalorder %v1788_v37, 2  ;;  %vm244_vm6 = vcmp.ge.s32.totalorder %v1788_v37, 1 }
  0x64   : > { %v184_v15 = vrot.slane %v183_v13, 1  ;;  %v190_v16 = vmax.f32 %v188_v10, %v189_v14  ;;  %v204_v24 = vadd.f32 %v203_v22, %v202_v17  ;;  %v198_v27 = vrot.slane %v197_v25, 1  ;;  %s1669_s30 = sld [smem:[#allocation6 + $0xa]] }
  0x65   : > { %3133 = sst [smem:[#allocation29_spill]] %s1661_s24  ;;  %v341_v35 = vstv %s1659_s23  ;;  %v373_v43 = vstv %s1661_s24  ;;  %vm254_vm8 = vcmp.lt.s32.totalorder %v1785_v36, 15  ;;  %vm255_vm9 = vcmp.lt.s32.totalorder %v1788_v37, 15 }
  0x66   : > { %v1627_v19 = vmax.f32 %v183_v13, %v184_v15  ;;  %v191_v20 = vrot.slane %v190_v16, 1  ;;  %v205_v26 = vrot.slane %v204_v24, 1  ;;  %v199_v29 = vadd.f32 %v198_v27, %v197_v25  ;;  %3134 = sst [smem:[#allocation30_spill]] %s1665_s26 }
  0x67   : > { %3135 = sst [smem:[#allocation31_spill]] %s1667_s27  ;;  %v377_v45 = vstv %s1665_s26  ;;  %vm262_vm10 = vcmp.lt.s32.totalorder %v1762_v33, 126  ;;  %vm218_vm11 = vcmp.lt.s32.totalorder %v1762_v33, 3  ;;  %vm265_vm12 = vcmp.lt.s32.totalorder %v1785_v36, 14 }
  0x68   : > { %3127 = vst [vmem:[#allocation23_spill] sm:$0xff] %v1627_v19  ;;  %225 = vrot.lane.b32.xlu1 %v1627_v19, %s1459_s15  ;;  %214 = vrot.lane.b32.xlu0 %v1627_v19, %s1460_s20  ;;  %v1631_v21 = vmax.f32 %v190_v16, %v191_v20  ;;  %v206_v28 = vadd.f32 %v205_v26, %v204_v24  ;;  %v1643_v31 = vmul.f32 0.25, %v199_v29  ;;  %s1671_s3 = sld [smem:[#allocation6 + $0xb]]  ;;  %vm266_vm13 = vcmp.lt.s32.totalorder %v1788_v37, 14 }
  0x69   : > { %s1675_s4 = sld [smem:[#allocation6 + $0xf]]  ;;  %v1796_v41 = vmul.f32 %v341_v35, %v1627_v19  ;;  %vm221_vm14 = vcmp.ge.s32.totalorder %v1785_v36, 3  ;;  %vm222_vm15 = vcmp.ge.s32.totalorder %v1788_v37, 3  ;;  %vm273_vm0 = vcmp.lt.s32.totalorder %v1762_v33, 125 }
  0x6a   : > { %3128 = vst [vmem:[#allocation24_spill] sm:$0xff] %v1631_v21  ;;  %v1641_v30 = vmul.f32 0.25, %v206_v28  ;;  %3130 = vst [vmem:[#allocation26_spill] sm:$0xff] %v1643_v31  ;;  %s1677_s8 = sld [smem:[#allocation6]]  ;;  %v381_v39 = vstv %s1669_s30  ;;  %v1803_v44 = vmul.f32 %v341_v35, %v1631_v21 }
  0x6b   : > { %s1689_s6 = sld [smem:[#allocation6 + $0x11]]  ;;  %v1812_v49 = vmul.f32 %v381_v39, %v1627_v19  ;;  %v1815_v50 = vmul.f32 %v381_v39, %v1631_v21 }
  0x6c   : > { %236 = vrot.lane.b32.xlu0 %v1627_v19, %s1461_s7  ;;  %227 = vrot.lane.b32.xlu1 %v1631_v21, %s1459_s15  ;;  %3129 = vst [vmem:[#allocation25_spill] sm:$0xff] %v1641_v30  ;;  %s1691_s0 = sld [smem:[#allocation6 + $0x12]] }
  0x6d   : > { %s1693_s1 = sld [smem:[#allocation6 + $0x13]] }
  0x6e   : > { %3136 = sst [smem:[#allocation32_spill]] %s1671_s3 }
  0x6f   : > { %3137 = sst [smem:[#allocation33_spill]] %s1675_s4  ;;  %v413_v51 = vstv %s1675_s4 }
  0x70   : > { %247 = vrot.lane.b32.xlu0 %v1627_v19, %s1462_s14  ;;  %238 = vrot.lane.b32.xlu1 %v1631_v21, %s1461_s7  ;;  %3138 = sst [smem:[#allocation34_spill]] %s1677_s8 }
  0x71   : > { %s1697_s28 = sld [smem:[#allocation6 + $0x1d]]  ;;  %v421_v47 = vstv %s1689_s6 }
  0x72   : > { %3144 = sst [smem:[#allocation40_spill]] %s1691_s0  ;;  %v1829_v58 = vmul.f32 %v421_v47, %v1627_v19  ;;  %v1836_v61 = vmul.f32 %v421_v47, %v1631_v21 }
  0x73   : > { %3145 = sst [smem:[#allocation41_spill]] %s1693_s1 }
  0x74   : > { %258 = vrot.lane.b32.xlu0 %v1627_v19, %s1463_s17  ;;  %249 = vrot.lane.b32.xlu1 %v1631_v21, %s1462_s14  ;;  %s1699_s11 = sld [smem:[#allocation6 + $0x1e]] }
  0x75   : > { %s1701_s10 = sld [smem:[#allocation6 + $0x1f]] }
  0x76   : > { %s1703_s21 = sld [smem:[#allocation6 + $0x20]] }
  0x77   : > { %3147 = sst [smem:[#allocation43_spill]] %s1697_s28 }
  0x78   : > { %260 = vrot.lane.b32.xlu1 %v1631_v21, %s1463_s17  ;;  %216 = vrot.lane.b32.xlu0 %v1631_v21, %s1460_s20  ;;  %s1705_s12 = sld [smem:[#allocation6 + $0x21]] }
  0x79   : > { %s1707_s16 = sld [smem:[#allocation6 + $0x24]] }
  0x7a   : > { %3148 = sst [smem:[#allocation44_spill]] %s1699_s11 }
  0x7b   : > { %s1709_s9 = sld [smem:[#allocation6 + $0x25]]  ;;  %v501_v55 = vstv %s1701_s10 }
  0x7c   : > { %282 = vrot.lane.b32.xlu1 %v1641_v30, %s1460_s20  ;;  %280 = vrot.lane.b32.xlu0 %v1643_v31, %s1460_s20  ;;  %s1681_s20 = sld [smem:[#allocation6 + $0x7]]  ;;  %v1845_v3 = vmul.f32 %v501_v55, %v1627_v19  ;;  %v1852_v6 = vmul.f32 %v501_v55, %v1631_v21 }
  0x7d   : > { %3149 = sst [smem:[#allocation45_spill]] %s1703_s21 }
  0x7e   : > { %3150 = sst [smem:[#allocation46_spill]] %s1705_s12 }
  0x7f   : > { %3151 = sst [smem:[#allocation47_spill]] %s1707_s16 }
  0x80   : > { %290 = vrot.lane.b32.xlu1 %v1641_v30, %s1459_s15  ;;  %288 = vrot.lane.b32.xlu0 %v1643_v31, %s1459_s15  ;;  %s1679_s15 = sld [smem:[#allocation6 + $0x5]] }
  0x81   : > { %3152 = sst [smem:[#allocation48_spill]] %s1709_s9 }
  0x82   : > { %3140 = sst [smem:[#allocation36_spill]] %s1681_s20 }
  0x83   : > { %s1711_s2 = sld [smem:[#allocation6 + $0x26]] }
  0x84   : > { %298 = vrot.lane.b32.xlu1 %v1641_v30, %s1461_s7  ;;  %296 = vrot.lane.b32.xlu0 %v1643_v31, %s1461_s7  ;;  %s1683_s7 = sld [smem:[#allocation6 + $0xc]] }
  0x85   : > { %s1713_s29 = sld [smem:[#allocation6 + $0x27]] }
  0x86   : > { %3139 = sst [smem:[#allocation35_spill]] %s1679_s15 }
  0x87   : > { %s1715_s5 = sld [smem:[#allocation6 + $0x23]] }
  0x88   : > { %306 = vrot.lane.b32.xlu1 %v1641_v30, %s1462_s14  ;;  %304 = vrot.lane.b32.xlu0 %v1643_v31, %s1462_s14  ;;  %s1685_s14 = sld [smem:[#allocation6 + $0xe]] }
  0x89   : > { %3153 = sst [smem:[#allocation49_spill]] %s1711_s2 }
  0x8a   : > { %3141 = sst [smem:[#allocation37_spill]] %s1683_s7 }
  0x8b   : > { %3154 = sst [smem:[#allocation50_spill]] %s1713_s29 }
  0x8c   : > { %314 = vrot.lane.b32.xlu1 %v1641_v30, %s1463_s17  ;;  %312 = vrot.lane.b32.xlu0 %v1643_v31, %s1463_s17  ;;  %s1687_s17 = sld [smem:[#allocation6 + $0x10]] }
  0x8d   : > { %3155 = sst [smem:[#allocation51_spill]] %s1715_s5 }
  0x8e   : > { %3142 = sst [smem:[#allocation38_spill]] %s1685_s14 }
  0x8f   : > { %s1717_s13 = sld [smem:[#allocation6 + $0x2b]] }
  0x90   : > { %271 = vrot.lane.b32.xlu1 %v1631_v21, %s1464_s25  ;;  %269 = vrot.lane.b32.xlu0 %v1627_v19, %s1464_s25  ;;  %s1719_s19 = sld [smem:[#allocation6 + $0x28]] }
  0x91   : > { %s1721_s11 = sld [smem:[#allocation6 + $0x2c]] }
  0x92   : > { %3143 = sst [smem:[#allocation39_spill]] %s1687_s17  ;;  %v417_v57 = vstv %s1687_s17 }
  0x93   : > { %s1723_s28 = sld [smem:[#allocation6 + $0x2d]] }
  0x94   : > { %322 = vrot.lane.b32.xlu1 %v1641_v30, %s1464_s25  ;;  %320 = vrot.lane.b32.xlu0 %v1643_v31, %s1464_s25  ;;  %s1695_s25 = sld [smem:[#allocation6 + $0x1c]] }
  0x95   : > { %3156 = sst [smem:[#allocation52_spill]] %s1717_s13 }
  0x96   : > { %3157 = sst [smem:[#allocation53_spill]] %s1719_s19 }
  0x97   : > { %3158 = sst [smem:[#allocation54_spill]] %s1721_s11 }
  0x98   : > { %s1725_s21 = sld [smem:[#allocation6 + $0x6]] }
  0x99   : > { %3159 = sst [smem:[#allocation55_spill]] %s1723_s28 }
  0x9a   : > { %3146 = sst [smem:[#allocation42_spill]] %s1695_s25 }
  0x9b   : > { %s1727_s12 = sld [smem:[#allocation6 + $0xd]] }
  0x9c   : > { %s1729_s16 = sld [smem:[#allocation6 + $0x2a]] }
  0x9d   : > { %s1731_s9 = sld [smem:[#allocation6 + $0x2e]] }
  0x9e   : > { %3160 = sst [smem:[#allocation56_spill]] %s1725_s21 }
  0x9f   : > { %s1733_s2 = sld [smem:[#allocation6 + $0x2f]] }
  0xa0   : > { %s1735_s29 = sld [smem:[#allocation6 + $0x14]] }
  0xa1   : > { %3161 = sst [smem:[#allocation57_spill]] %s1727_s12 }
  0xa2   : > { %3162 = sst [smem:[#allocation58_spill]] %s1729_s16 }
  0xa3   : > { %3163 = sst [smem:[#allocation59_spill]] %s1731_s9 }
  0xa4   : > { %s1737_s5 = sld [smem:[#allocation6 + $0x22]] }
  0xa5   : > { %3164 = sst [smem:[#allocation60_spill]] %s1733_s2 }
  0xa6   : > { %3165 = sst [smem:[#allocation61_spill]] %s1735_s29 }
  0xa7   : > { %s1739_s13 = sld [smem:[#allocation6 + $0x31]] }
  0xa8   : > { %s1741_s19 = sld [smem:[#allocation6 + $0x38]] }
  0xa9   : > { %s1743_s11 = sld [smem:[#allocation6 + $0x3f]] }
  0xaa   : > { %s1745_s28 = sld [smem:[#allocation6 + $0x29]] }
  0xab   : > { %s1747_s21 = sld [smem:[#allocation6 + $0x32]] }
  0xac   : > { %s1749_s16 = sld [smem:[#allocation6 + $0x39]] }
  0xad   : > { %3166 = sst [smem:[#allocation62_spill]] %s1739_s13 }
  0xae   : > { %3167 = sst [smem:[#allocation63_spill]] %s1741_s19 }
  0xaf   : > { %3168 = sst [smem:[#allocation64_spill]] %s1743_s11 }
  0xb0   : > { %s1751_s9 = sld [smem:[#allocation6 + $0x4d]] }
  0xb1   : > { %s1753_s2 = sld [smem:[#allocation6 + $0x33]] }
  0xb2   : > { %3169 = sst [smem:[#allocation65_spill]] %s1749_s16 }
  0xb3   : > { %s1755_s29 = sld [smem:[#allocation6 + $0x34]] }
  0xb4   : > { %s1757_s13 = sld [smem:[#allocation6 + $0x30]] }
  0xb5   : > { %s1759_s19 = sld [smem:[#allocation6 + $0x3a]] }
  0xb6   : > { %3170 = sst [smem:[#allocation66_spill]] %s1751_s9 }
  0xb7   : > { %3171 = sst [smem:[#allocation67_spill]] %s1753_s2 }
  0xb8   : > { %s1764_s11 = sld [smem:[#allocation6 + $0x35]] }
  0xb9   : > { %s1766_s16 = sld [smem:[#allocation6 + $0x3b]]  ;;  %v621_v29 = vstv %s1755_s29 }
  0xba   : > { %3172 = sst [smem:[#allocation68_spill]] %s1757_s13  ;;  %v1912_v27 = vmul.f32 %v621_v29, %v1643_v31  ;;  %v1915_v47 = vmul.f32 %v621_v29, %v1641_v30 }
  0xbb   : > { %3173 = sst [smem:[#allocation69_spill]] %s1759_s19 }
  0xbc   : > { %s1768_s9 = sld [smem:[#allocation6 + $0x3c]]  ;;  %3215 = vst [vmem:[#allocation76_spill] sm:$0xff] %v1915_v47 }
  0xbd   : > { %s1770_s2 = sld [smem:[#allocation6 + $0x36]] }
  0xbe   : > { %3174 = sst [smem:[#allocation70_spill]] %s1764_s11 }
  0xbf   : > { %3175 = sst [smem:[#allocation71_spill]] %s1766_s16 }
  0xc0   : > { %s1775_s13 = sld [smem:[#allocation6 + $0x37]] }
  0xc1   : > { %s1777_s19 = sld [smem:[#allocation6 + $0x3d]] }
  0xc2   : > { %3176 = sst [smem:[#allocation72_spill]] %s1768_s9 }
  0xc3   : > { %s1780_s11 = sld [smem:[#allocation6 + $0x40]] }
  0xc4   : > { %s1782_s16 = sld [smem:[#allocation6 + $0x3e]] }
  0xc5   : > { %s1800_s23 = sld [smem:[#allocation6 + $0x42]] }
  0xc6   : > { %3178 = sst [smem:[#allocation74_spill]] %s1775_s13 }
  0xc7   : > { %s1792_s13 = sld [smem:[#allocation6 + $0x41]] }
  0xc8   : > { %s1808_s30 = sld [smem:[#allocation6 + $0x43]] }
  0xc9   : > { %s3180_s27 = sld [smem:[#allocation49_spill]] }
  0xca   : > { %s1818_s22 = sld [smem:[#allocation6 + $0x44]] }
  0xcb   : > { %s3182_s24 = sld [smem:[#allocation43_spill]] }
  0xcc   : > { %s3183_s3 = sld [smem:[#allocation44_spill]] }
  0xcd   : > { %s1824_s26 = sld [smem:[#allocation6 + $0x45]] }
  0xce   : > { %3179 = sst [smem:[#allocation75_spill]] %s1808_s30 }
  0xcf   : > { %s3186_s18 = sld [smem:[#allocation47_spill]]  ;;  %v541_v63 = vstv %s3180_s27 }
  0xd0   : > { %3181 = sst [smem:[#allocation49_spill]] %s1818_s22  ;;  %v1860_v10 = vmul.f32 %v541_v63, %v1627_v19  ;;  %v1864_v12 = vmul.f32 %v541_v63, %v1631_v21  ;;  %v701_v63 = vstv %s1800_s23 }
  0xd1   : > { %s3187_s30 = sld [smem:[#allocation55_spill]]  ;;  %v493_v0 = vstv %s3182_s24  ;;  %v1944_v26 = vmul.f32 %v701_v63, %v1643_v31  ;;  %v1950_v35 = vmul.f32 %v701_v63, %v1641_v30 }
  0xd2   : > { %s1832_s4 = sld [smem:[#allocation6 + $0x4e]]  ;;  %v497_v1 = vstv %s3183_s3 }
  0xd3   : > { %s1840_s10 = sld [smem:[#allocation6 + $0x4f]]  ;;  %3224 = vst [vmem:[#allocation79_spill] sm:$0xff] %v1944_v26  ;;  %3226 = vst [vmem:[#allocation80_spill] sm:$0xff] %v1950_v35 }
  0xd4   : > { %s3192_s15 = sld [smem:[#allocation52_spill]] }
  0xd5   : > { %s1848_s17 = sld [smem:[#allocation6 + $0x50]]  ;;  %v533_v7 = vstv %s3186_s18 }
  0xd6   : > { %s1856_s27 = sld [smem:[#allocation6 + $0x51]] }
  0xd7   : > { %v581_v8 = vstv %s3187_s30  ;;  %s3196_s3 = sld [smem:[#allocation58_spill]] }
  0xd8   : > { %s3198_s6 = sld [smem:[#allocation60_spill]]  ;;  %v1877_v20 = vmul.f32 %v581_v8, %v1627_v19  ;;  %v1880_v22 = vmul.f32 %v581_v8, %v1631_v21 }
  0xd9   : > { %s1866_s8 = sld [smem:[#allocation6 + $0x52]] }
  0xda   : > { %s3200_s30 = sld [smem:[#allocation62_spill]]  ;;  %v573_v15 = vstv %s3192_s15  ;;  %v226_v18 = vpop.permute.xlu1 %225  ;;  %v1938_v32 = vpop.permute.xlu0 %214 }
  0xdb   : > { %s1872_s18 = sld [smem:[#allocation6 + $0x53]]  ;;  %v781_v23 = vstv %s1848_s17 }
  0xdc   : > { %s1882_s7 = sld [smem:[#allocation6 + $0x54]]  ;;  %v1956_v17 = vmul.f32 %v781_v23, %v1643_v31  ;;  %v1965_v63 = vmul.f32 %v781_v23, %v1641_v30 }
  0xdd   : > { %s3204_s20 = sld [smem:[#allocation71_spill]] }
  0xde   : > { %s3206_s0 = sld [smem:[#allocation68_spill]]  ;;  %3227 = vst [vmem:[#allocation81_spill] sm:$0xff] %v1956_v17  ;;  %3228 = vst [vmem:[#allocation82_spill] sm:$0xff] %v1965_v63  ;;  %v237_v14 = vpop.permute.xlu0 %236  ;;  %v228_v11 = vpop.permute.xlu1 %227 }
  0xdf   : > { %3199 = sst [smem:[#allocation55_spill]] %s1866_s8  ;;  %v230_v5 = vsel %vm229_vm1, %v226_v18, %v228_v11  ;;  %v231_v29 = vsel %vm229_vm1, %v228_v11, %v226_v18 }
  0xe0   : > { %s3207_s15 = sld [smem:[#allocation67_spill]]  ;;  %v1981_v23 = vsel %vm232_vm2, %v231_v29, 0.0  ;;  %v1985_v9 = vsel %vm233_vm3, %v230_v5, 0.0 }
  0xe1   : > { %3202 = sst [smem:[#allocation58_spill]] %s1872_s18  ;;  %3231 = vst [vmem:[#allocation84_spill] sm:$0xff] %v1981_v23  ;;  %3233 = vst [vmem:[#allocation85_spill] sm:$0xff] %v1985_v9  ;;  %v2000_v5 = vmul.f32 %v333_v38, %v1981_v23  ;;  %v2005_v29 = vmul.f32 %v333_v38, %v1985_v9  ;;  %v2021_v38 = vmul.f32 %v373_v43, %v1985_v9 }
  0xe2   : > { %3203 = sst [smem:[#allocation60_spill]] %s1882_s7  ;;  %v248_v24 = vpop.permute.xlu0 %247  ;;  %v239_v39 = vpop.permute.xlu1 %238  ;;  %v2026_v4 = vmul.f32 %v413_v51, %v1981_v23  ;;  %v2045_v56 = vmul.f32 %v493_v0, %v1985_v9  ;;  %v2086_v46 = vmul.f32 %v573_v15, %v1981_v23 }
  0xe3   : > { %s1888_s1 = sld [smem:[#allocation6 + $0x55]]  ;;  %v661_v55 = vstv %s3204_s20  ;;  %v241_v62 = vsel %vm240_vm4, %v237_v14, %v239_v39  ;;  %v242_v60 = vsel %vm240_vm4, %v239_v39, %v237_v14  ;;  %v2058_v14 = vmul.f32 %v533_v7, %v1981_v23 }
  0xe4   : > { %s1895_s7 = sld [smem:[#allocation6 + $0x57]]  ;;  %v1924_v28 = vmul.f32 %v661_v55, %v1643_v31  ;;  %v1928_v8 = vmul.f32 %v661_v55, %v1641_v30  ;;  %v2016_v55 = vmul.f32 %v373_v43, %v1981_v23  ;;  %v2040_v43 = vmul.f32 %v493_v0, %v1981_v23 }
  0xe5   : > { %s3212_s25 = sld [smem:[#allocation70_spill]]  ;;  %v2053_v54 = vsel %vm244_vm6, %v241_v62, 0.0  ;;  %v2063_v39 = vmul.f32 %v533_v7, %v1985_v9 }
  0xe6   : > { %s1903_s24 = sld [smem:[#allocation6 + $0x56]]  ;;  %3217 = vst [vmem:[#allocation77_spill] sm:$0xff] %v1924_v28  ;;  %3220 = vst [vmem:[#allocation78_spill] sm:$0xff] %v1928_v8  ;;  %v379_v62 = vmul.f32 %v377_v45, %v2053_v54  ;;  %v259_v52 = vpop.permute.xlu0 %258  ;;  %v250_v48 = vpop.permute.xlu1 %249  ;;  %v419_v59 = vmul.f32 %v417_v57, %v2053_v54  ;;  %v2105_v2 = vmul.f32 %v497_v1, %v2053_v54 }
  0xe7   : > { %s3214_s29 = sld [smem:[#allocation74_spill]]  ;;  %3246 = vst [vmem:[#allocation90_spill] sm:$0xff] %v2053_v54  ;;  %v253_v42 = vsel %vm251_vm7, %v250_v48, %v248_v24 }
  0xe8   : > { %s1909_s22 = sld [smem:[#allocation6 + $0x5e]]  ;;  %v2113_v34 = vsel %vm255_vm9, %v253_v42, 0.0  ;;  %v439_v28 = vadd.f32 %v1836_v61, %v419_v59 }
  0xe9   : > { %3208 = sst [smem:[#allocation62_spill]] %s1888_s1  ;;  %3251 = vst [vmem:[#allocation92_spill] sm:$0xff] %v2113_v34 }
  0xea   : > { %s1919_s20 = sld [smem:[#allocation6 + $0x58]]  ;;  %v821_v25 = vstv %s1895_s7  ;;  %v217_v42 = vpop.permute.xlu0 %216 }
  0xeb   : > { %s3218_s18 = sld [smem:[#allocation75_spill]]  ;;  %v1976_v16 = vmul.f32 %v821_v25, %v1643_v31  ;;  %v1991_v18 = vmul.f32 %v821_v25, %v1641_v30 }
  0xec   : > { %3213 = sst [smem:[#allocation71_spill]] %s1903_s24 }
  0xed   : > { %s3219_s14 = sld [smem:[#allocation49_spill]]  ;;  %3230 = vst [vmem:[#allocation83_spill] sm:$0xff] %v1976_v16  ;;  %3235 = vst [vmem:[#allocation86_spill] sm:$0xff] %v1991_v18 }
  0xee   : > { %s1930_s8 = sld [smem:[#allocation6 + $0x59]]  ;;  %v861_v13 = vstv %s1909_s22  ;;  %v281_v18 = vpop.permute.xlu0 %280 }
  0xef   : > { %s3222_s23 = sld [smem:[#allocation55_spill]]  ;;  %v2008_v25 = vmul.f32 %v861_v13, %v1643_v31  ;;  %v2011_v11 = vmul.f32 %v861_v13, %v1641_v30  ;;  %v2031_v13 = vmul.f32 %v413_v51, %v1985_v9  ;;  %v2049_v51 = vsel %vm243_vm5, %v242_v60, 0.0  ;;  %v261_v30 = vpop.permute.xlu1 %260 }
  0xf0   : > { %3216 = sst [smem:[#allocation68_spill]] %s1919_s20  ;;  %3244 = vst [vmem:[#allocation89_spill] sm:$0xff] %v2049_v51  ;;  %v338_v0 = vmul.f32 %v337_v40, %v2049_v51  ;;  %v339_v60 = vmul.f32 %v337_v40, %v2053_v54  ;;  %v378_v53 = vmul.f32 %v377_v45, %v2049_v51  ;;  %v418_v7 = vmul.f32 %v417_v57, %v2049_v51 }
  0xf1   : > { %s3223_s9 = sld [smem:[#allocation58_spill]]  ;;  %3238 = vst [vmem:[#allocation87_spill] sm:$0xff] %v2008_v25  ;;  %3240 = vst [vmem:[#allocation88_spill] sm:$0xff] %v2011_v11  ;;  %v2091_v40 = vmul.f32 %v573_v15, %v1985_v9  ;;  %v252_v45 = vsel %vm251_vm7, %v248_v24, %v250_v48  ;;  %v2100_v57 = vmul.f32 %v497_v1, %v2049_v51 }
  0xf2   : > { %s3247_s20 = sld [smem:[#allocation31_spill]]  ;;  %v2109_v15 = vsel %vm254_vm8, %v252_v45, 0.0  ;;  %v358_v9 = vadd.f32 %v1796_v41, %v338_v0  ;;  %v359_v48 = vadd.f32 %v1803_v44, %v339_v60  ;;  %v398_v1 = vadd.f32 %v1812_v49, %v378_v53 }
  0xf3   : > { %s3248_s24 = sld [smem:[#allocation32_spill]]  ;;  %3250 = vst [vmem:[#allocation91_spill] sm:$0xff] %v2109_v15  ;;  %v399_v45 = vadd.f32 %v1815_v50, %v379_v62  ;;  %v263_v49 = vsel %vm262_vm10, %v259_v52, %v261_v30  ;;  %v264_v50 = vsel %vm262_vm10, %v261_v30, %v259_v52  ;;  %v220_v53 = vsel %vm218_vm11, %v217_v42, %v1938_v32  ;;  %v283_v25 = vpop.permute.xlu1 %282 }
  0xf4   : > { %3221 = sst [smem:[#allocation67_spill]] %s1930_s8  ;;  %v2151_v62 = vsel %vm266_vm13, %v264_v50, 0.0  ;;  %v2155_v30 = vsel %vm221_vm14, %v220_v53, 0.0 }
  0xf5   : > { %s3249_s1 = sld [smem:[#allocation40_spill]]  ;;  %3262 = vst [vmem:[#allocation94_spill] sm:$0xff] %v2155_v30 }
  0xf6   : > { %s3254_s12 = sld [smem:[#allocation34_spill]] }
  0xf7   : > { %s3255_s8 = sld [smem:[#allocation35_spill]] }
  0xf8   : > { %v3252_v24 = vstv %s3247_s20  ;;  %s3259_s22 = sld [smem:[#allocation36_spill]] }
  0xf9   : > { %v346_v23 = vmul.f32 %v3252_v24, %v2109_v15  ;;  %v3253_v21 = vmov %v3252_v24  ;;  %v3256_v31 = vstv %s3248_s24  ;;  %s3260_s17 = sld [smem:[#allocation37_spill]] }
  0xfa   : > { %v347_v19 = vmul.f32 %v3253_v21, %v2113_v34  ;;  %v386_v41 = vmul.f32 %v3256_v31, %v2109_v15  ;;  %v3257_v44 = vmov %v3256_v31  ;;  %v438_v21 = vadd.f32 %v1829_v58, %v418_v7  ;;  %s3272_s7 = sld [smem:[#allocation38_spill]] }
  0xfb   : > { %v387_v0 = vmul.f32 %v3257_v44, %v2113_v34  ;;  %v3258_v60 = vstv %s3249_s1  ;;  %v219_v31 = vsel %vm218_vm11, %v1938_v32, %v217_v42  ;;  %v2147_v58 = vsel %vm265_vm12, %v263_v49, 0.0  ;;  %s3273_s20 = sld [smem:[#allocation41_spill]] }
  0xfc   : > { %v426_v24 = vmul.f32 %v3258_v60, %v2109_v15  ;;  %3261 = vst [vmem:[#allocation93_spill] sm:$0xff] %v2147_v58  ;;  %v2159_v52 = vsel %vm222_vm15, %v219_v31, 0.0  ;;  %v3264_v7 = vstv %s3254_s12  ;;  %v3271_v35 = vstv %s3249_s1  ;;  %s3275_s24 = sld [smem:[#allocation42_spill]] }
  0xfd   : > { %3263 = vst [vmem:[#allocation95_spill] sm:$0xff] %v2159_v52  ;;  %v330_v32 = vmul.f32 %v3264_v7, %v2155_v30  ;;  %v3265_v42 = vstv %s3255_s8  ;;  %v3266_v60 = vmov %v3264_v7  ;;  %s3278_s1 = sld [smem:[#allocation45_spill]] }
  0xfe   : > { %v350_v44 = vmul.f32 %v3265_v42, %v2147_v58  ;;  %v331_v49 = vmul.f32 %v3266_v60, %v2159_v52  ;;  %v3267_v50 = vmov %v3265_v42  ;;  %v3268_v53 = vstv %s3259_s22  ;;  %s3279_s12 = sld [smem:[#allocation46_spill]] }
  0xff   : > { %v351_v11 = vmul.f32 %v3267_v50, %v2151_v62  ;;  %v370_v16 = vmul.f32 %v3268_v53, %v2155_v30  ;;  %v3269_v31 = vstv %s3260_s17  ;;  %v3270_v17 = vmov %v3268_v53  ;;  %s3286_s8 = sld [smem:[#allocation51_spill]] }
 0x100   : > { %v390_v63 = vmul.f32 %v3269_v31, %v2147_v58  ;;  %v371_v7 = vmul.f32 %v3270_v17, %v2159_v52  ;;  %v427_v42 = vmul.f32 %v3271_v35, %v2113_v34  ;;  %v284_v60 = vsel %vm218_vm11, %v281_v18, %v283_v25  ;;  %s3287_s22 = sld [smem:[#allocation48_spill]] }
 0x101   : > { %v285_v50 = vsel %vm218_vm11, %v283_v25, %v281_v18  ;;  %v356_v26 = vadd.f32 %v2000_v5, %v330_v32  ;;  %v3274_v53 = vmov %v3269_v31  ;;  %v2197_v17 = vadd.f32 %v350_v44, %v346_v23  ;;  %v291_v32 = vpop.permute.xlu1 %290  ;;  %s3288_s17 = sld [smem:[#allocation50_spill]] }
 0x102   : > { %v391_v8 = vmul.f32 %v3274_v53, %v2151_v62  ;;  %v2195_v31 = vsel %vm221_vm14, %v285_v50, 0.0  ;;  %v357_v35 = vadd.f32 %v2005_v29, %v331_v49  ;;  %v2203_v47 = vsel %vm222_vm15, %v284_v60, 0.0  ;;  %v289_v50 = vpop.permute.xlu0 %288 }
 0x103   : > { %v2205_v18 = vadd.f32 %v351_v11, %v347_v19  ;;  %v396_v5 = vadd.f32 %v2016_v55, %v370_v16  ;;  %v397_v25 = vadd.f32 %v2021_v38, %v371_v7  ;;  %v2209_v23 = vadd.f32 %v358_v9, %v356_v26 }
 0x104   : > { %v2211_v29 = vadd.f32 %v390_v63, %v386_v41  ;;  %v3276_v59 = vstv %s3272_s7  ;;  %v3277_v44 = vstv %s3273_s20  ;;  %v292_v16 = vsel %vm229_vm1, %v289_v50, %v291_v32  ;;  %s3289_s7 = sld [smem:[#allocation53_spill]] }
 0x105   : > { %v410_v61 = vmul.f32 %v3276_v59, %v2155_v30  ;;  %v430_v19 = vmul.f32 %v3277_v44, %v2147_v58  ;;  %v293_v55 = vsel %vm229_vm1, %v291_v32, %v289_v50  ;;  %v2223_v11 = vadd.f32 %v359_v48, %v357_v35  ;;  %v299_v35 = vpop.permute.xlu1 %298  ;;  %s3298_s20 = sld [smem:[#allocation54_spill]] }
 0x106   : > { %v2225_v9 = vadd.f32 %v391_v8, %v387_v0  ;;  %v2229_v26 = vsel %vm232_vm2, %v293_v55, 0.0  ;;  %v2231_v63 = vadd.f32 %v398_v1, %v396_v5  ;;  %v2233_v38 = vadd.f32 %v399_v45, %v397_v25  ;;  %v297_v1 = vpop.permute.xlu0 %296 }
 0x107   : > { %v436_v41 = vadd.f32 %v2026_v4, %v410_v61  ;;  %v2238_v49 = vsel %vm233_vm3, %v292_v16, 0.0  ;;  %v3280_v7 = vmov %v3276_v59  ;;  %v3281_v8 = vmov %v3277_v44 }
 0x108   : > { %v411_v48 = vmul.f32 %v3280_v7, %v2159_v52  ;;  %v431_v0 = vmul.f32 %v3281_v8, %v2151_v62  ;;  %v3282_v60 = vstv %s3275_s24  ;;  %v2249_v5 = vadd.f32 %v430_v19, %v426_v24  ;;  %s3301_s24 = sld [smem:[#allocation59_spill]] }
 0x109   : > { %v490_v53 = vmul.f32 %v3282_v60, %v2155_v30  ;;  %v3283_v45 = vstv %s3278_s1  ;;  %v3284_v25 = vstv %s3279_s12  ;;  %v3285_v50 = vmov %v3282_v60  ;;  %s3304_s1 = sld [smem:[#allocation56_spill]] }
 0x10a   : > { %v506_v4 = vmul.f32 %v3283_v45, %v2109_v15  ;;  %v510_v32 = vmul.f32 %v3284_v25, %v2147_v58  ;;  %v491_v59 = vmul.f32 %v3285_v50, %v2159_v52  ;;  %v300_v61 = vsel %vm240_vm4, %v297_v1, %v299_v35  ;;  %s3305_s12 = sld [smem:[#allocation57_spill]] }
 0x10b   : > { %v301_v44 = vsel %vm240_vm4, %v299_v35, %v297_v1  ;;  %v2264_v16 = vadd.f32 %v438_v21, %v436_v41  ;;  %v437_v24 = vadd.f32 %v2031_v13, %v411_v48  ;;  %v2272_v55 = vadd.f32 %v431_v0, %v427_v42  ;;  %v307_v48 = vpop.permute.xlu1 %306 }
 0x10c   : > { %v2269_v19 = vsel %vm243_vm5, %v301_v44, 0.0  ;;  %v516_v7 = vadd.f32 %v2040_v43, %v490_v53  ;;  %v518_v8 = vadd.f32 %v1845_v3, %v2100_v57  ;;  %v2279_v21 = vsel %vm244_vm6, %v300_v61, 0.0  ;;  %v305_v3 = vpop.permute.xlu0 %304 }
 0x10d   : > { %vm276_vm1 = vcmp.lt.s32.totalorder %v1785_v36, 13  ;;  %vm277_vm2 = vcmp.lt.s32.totalorder %v1788_v37, 13  ;;  %v2283_v13 = vadd.f32 %v439_v28, %v437_v24  ;;  %v2285_v41 = vadd.f32 %v510_v32, %v506_v4 }
 0x10e   : > { %v3290_v42 = vmov %v3284_v25  ;;  %v3291_v57 = vmov %v3283_v45  ;;  %v517_v60 = vadd.f32 %v2045_v56, %v491_v59  ;;  %v3292_v53 = vstv %s3286_s8  ;;  %s3308_s8 = sld [smem:[#allocation61_spill]] }
 0x10f   : > { %v511_v43 = vmul.f32 %v3290_v42, %v2151_v62  ;;  %v507_v0 = vmul.f32 %v3291_v57, %v2113_v34  ;;  %v530_v35 = vmul.f32 %v3292_v53, %v2155_v30  ;;  %v3293_v28 = vstv %s3287_s22  ;;  %s3333_s22 = sld [smem:[#allocation65_spill]] }
 0x110   : > { %v538_v1 = vmul.f32 %v3293_v28, %v2049_v51  ;;  %v308_v45 = vsel %vm251_vm7, %v305_v3, %v307_v48  ;;  %v309_v4 = vsel %vm251_vm7, %v307_v48, %v305_v3  ;;  %v2304_v25 = vadd.f32 %v518_v8, %v516_v7  ;;  %v313_v3 = vpop.permute.xlu0 %312 }
 0x111   : > { %v519_v32 = vadd.f32 %v1852_v6, %v2105_v2  ;;  %v2310_v56 = vsel %vm254_vm8, %v308_v45, 0.0  ;;  %v2312_v50 = vadd.f32 %v511_v43, %v507_v0  ;;  %v3294_v59 = vstv %s3288_s17  ;;  %v315_v43 = vpop.permute.xlu1 %314  ;;  %s1467_s17 = smov 16  }
 0x112   : > { %v546_v61 = vmul.f32 %v3294_v59, %v2109_v15  ;;  %v3295_v44 = vstv %s3289_s7  ;;  %v2322_v7 = vsel %vm255_vm9, %v309_v4, 0.0  ;;  %v556_v8 = vadd.f32 %v2058_v14, %v530_v35  ;;  %s3334_s7 = sld [smem:[#allocation69_spill]] }
 0x113   : > { %v550_v24 = vmul.f32 %v3295_v44, %v2147_v58  ;;  %v3296_v2 = vmov %v3292_v53  ;;  %v3297_v42 = vmov %v3293_v28  ;;  %v2331_v57 = vadd.f32 %v519_v32, %v517_v60 }
 0x114   : > { %v531_v6 = vmul.f32 %v3296_v2, %v2159_v52  ;;  %v539_v48 = vmul.f32 %v3297_v42, %v2053_v54  ;;  %v558_v0 = vadd.f32 %v1860_v10, %v538_v1  ;;  %v3299_v53 = vmov %v3295_v44 }
 0x115   : > { %v551_v28 = vmul.f32 %v3299_v53, %v2151_v62  ;;  %v3300_v45 = vstv %s3196_s3  ;;  %v316_v35 = vsel %vm262_vm10, %v313_v3, %v315_v43  ;;  %v317_v4 = vsel %vm262_vm10, %v315_v43, %v313_v3 }
 0x116   : > { %v570_v14 = vmul.f32 %v3300_v45, %v2155_v30  ;;  %v547_v60 = vmul.f32 %v3294_v59, %v2113_v34  ;;  %v557_v32 = vadd.f32 %v2063_v39, %v531_v6  ;;  %v2350_v10 = vsel %vm265_vm12, %v316_v35, 0.0  ;;  %v272_v45 = vpop.permute.xlu1 %271 }
 0x117   : > { %v560_v1 = vadd.f32 %v550_v24, %v546_v61  ;;  %v2352_v44 = vadd.f32 %v558_v0, %v556_v8  ;;  %v559_v2 = vadd.f32 %v1864_v12, %v539_v48  ;;  %v2357_v42 = vsel %vm266_vm13, %v317_v4, 0.0  ;;  %v270_v61 = vpop.permute.xlu0 %269 }
 0x118   : > { %v561_v43 = vadd.f32 %v551_v28, %v547_v60  ;;  %v3302_v3 = vstv %s3298_s20  ;;  %v3303_v39 = vstv %s3198_s6  ;;  %v3306_v12 = vstv %s3301_s24  ;;  %s3335_s20 = sld [smem:[#allocation72_spill]] }
 0x119   : > { %v578_v53 = vmul.f32 %v3302_v3, %v2049_v51  ;;  %v590_v6 = vmul.f32 %v3303_v39, %v2147_v58  ;;  %v2365_v24 = vadd.f32 %v559_v2, %v557_v32  ;;  %v586_v8 = vmul.f32 %v3306_v12, %v2109_v15  ;;  %s2597_s24 = sld [smem:[#allocation6 + $0x60]] }
 0x11a   : > { %v596_v48 = vadd.f32 %v2086_v46, %v570_v14  ;;  %v3307_v0 = vstv %s3196_s3  ;;  %v274_v35 = vsel %vm273_vm0, %v270_v61, %v272_v45  ;;  %v275_v4 = vsel %vm273_vm0, %v272_v45, %v270_v61  ;;  %s2448_s3 = sld [smem:[#allocation6 + $0x5a]] }
 0x11b   : > { %v571_v28 = vmul.f32 %v3307_v0, %v2159_v52  ;;  %v3309_v59 = vmov %v3302_v3  ;;  %v3310_v32 = vmov %v3306_v12  ;;  %v2386_v46 = vsel %vm276_vm1, %v274_v35, 0.0  ;;  %v321_v15 = vpop.permute.xlu0 %320 }
 0x11c   : > { %v579_v60 = vmul.f32 %v3309_v59, %v2053_v54  ;;  %v587_v2 = vmul.f32 %v3310_v32, %v2113_v34  ;;  %v2390_v14 = vsel %vm277_vm2, %v275_v4, 0.0  ;;  %v598_v3 = vadd.f32 %v1877_v20, %v578_v53  ;;  %v323_v54 = vpop.permute.xlu1 %322 }
 0x11d   : > { %v600_v39 = vadd.f32 %v590_v6, %v586_v8  ;;  %v3311_v45 = vstv %s3304_s1  ;;  %v3313_v59 = vstv %s3305_s12  ;;  %v3315_v4 = vstv %s3308_s8  ;;  %s3386_s1 = sld [smem:[#allocation67_spill]] }
 0x11e   : > { %v354_v61 = vmul.f32 %v3311_v45, %v2386_v46  ;;  %v3312_v12 = vmov %v3311_v45  ;;  %v394_v32 = vmul.f32 %v3313_v59, %v2386_v46  ;;  %v3314_v35 = vmov %v3313_v59  ;;  %s2740_s12 = sld [smem:[#allocation6 + $0x4b]] }
 0x11f   : > { %v355_v0 = vmul.f32 %v3312_v12, %v2390_v14  ;;  %v395_v34 = vmul.f32 %v3314_v35, %v2390_v14  ;;  %v434_v51 = vmul.f32 %v3315_v4, %v2386_v46  ;;  %v3316_v20 = vmov %v3315_v4  ;;  %s2744_s8 = sld [smem:[#allocation6 + $0x4c]] }
 0x120   : > { %v435_v53 = vmul.f32 %v3316_v20, %v2390_v14  ;;  %v3317_v6 = vstv %s1737_s5  ;;  %v364_v52 = vadd.f32 %v2197_v17, %v354_v61  ;;  %v3319_v35 = vstv %s3198_s6  ;;  %s1465_s5 = smov 48   ;;  %s3332_s6 = sld [smem:[#allocation63_spill]] }
 0x121   : > { %v514_v8 = vmul.f32 %v3317_v6, %v2386_v46  ;;  %v3318_v45 = vmov %v3317_v6  ;;  %v365_v59 = vadd.f32 %v2205_v18, %v355_v0  ;;  %v591_v58 = vmul.f32 %v3319_v35, %v2151_v62 }
 0x122   : > { %v515_v12 = vmul.f32 %v3318_v45, %v2390_v14  ;;  %v597_v30 = vadd.f32 %v2091_v40, %v571_v28  ;;  %v324_v4 = vsel %vm273_vm0, %v321_v15, %v323_v54  ;;  %v325_v20 = vsel %vm273_vm0, %v323_v54, %v321_v15 }
 0x123   : > { %v404_v6 = vadd.f32 %v2211_v29, %v394_v32  ;;  %v405_v45 = vadd.f32 %v2225_v9, %v395_v34  ;;  %v366_v17 = vadd.f32 %v364_v52, %v2209_v23  ;;  %v367_v18 = vadd.f32 %v365_v59, %v2223_v11 }
 0x124   : > { %v444_v61 = vadd.f32 %v2249_v5, %v434_v51  ;;  %v445_v40 = vadd.f32 %v2272_v55, %v435_v53  ;;  %v524_v54 = vadd.f32 %v2285_v41, %v514_v8  ;;  %v525_v15 = vadd.f32 %v2312_v50, %v515_v12 }
 0x125   : > { %v406_v28 = vadd.f32 %v404_v6, %v2231_v63  ;;  %v407_v0 = vadd.f32 %v405_v45, %v2233_v38  ;;  %v2439_v34 = vsel %vm276_vm1, %v324_v4, 0.0  ;;  %888 = vrot.lane.b32.xlu0 %v366_v17, %s1465_s5  ;;  %890 = vrot.lane.b32.xlu1 %v367_v18, %s1465_s5  ;;  %v3320_v23 = vstv %s1745_s28  ;;  %s1466_s28 = smov 32  }
 0x126   : > { %v446_v51 = vadd.f32 %v444_v61, %v2264_v16  ;;  %v447_v52 = vadd.f32 %v445_v40, %v2283_v13  ;;  %v554_v29 = vmul.f32 %v3320_v23, %v2386_v46  ;;  %v526_v11 = vadd.f32 %v524_v54, %v2304_v25 }
 0x127   : > { %v527_v36 = vadd.f32 %v525_v15, %v2331_v57  ;;  %v3321_v9 = vmov %v3320_v23  ;;  %v3322_v38 = vstv %s3206_s0  ;;  %v602_v16 = vadd.f32 %v598_v3, %v596_v48  ;;  %s2475_s0 = sld [smem:[#allocation6 + $0x5b]] }
 0x128   : > { %v555_v63 = vmul.f32 %v3321_v9, %v2390_v14  ;;  %v594_v5 = vmul.f32 %v3322_v38, %v2386_v46  ;;  %v564_v55 = vadd.f32 %v560_v1, %v554_v29  ;;  %v3323_v13 = vmov %v3322_v38 }
 0x129   : > { %v595_v41 = vmul.f32 %v3323_v13, %v2390_v14  ;;  %v599_v50 = vadd.f32 %v1880_v22, %v579_v60  ;;  %v601_v57 = vadd.f32 %v591_v58, %v587_v2  ;;  %v3324_v53 = vstv %s3200_s30  ;;  %899 = vrot.lane.b32.xlu0 %v406_v28, %s1466_s28  ;;  %901 = vrot.lane.b32.xlu1 %v407_v0, %s1466_s28  ;;  %s1469_s30 = smov 96  }
 0x12a   : > { %v565_v32 = vadd.f32 %v561_v43, %v555_v63  ;;  %v604_v25 = vadd.f32 %v600_v39, %v594_v5  ;;  %v610_v8 = vmul.f32 %v3324_v53, %v2195_v31  ;;  %v2467_v12 = vsel %vm277_vm2, %v325_v20, 0.0  ;;  %v3340_v5 = vld [vmem:[#allocation76_spill] sm:$0xff] }
 0x12b   : > { %v566_v22 = vadd.f32 %v564_v55, %v2352_v44  ;;  %v603_v1 = vadd.f32 %v599_v50, %v597_v30  ;;  %v3325_v58 = vstv %s1747_s21  ;;  %v605_v60 = vadd.f32 %v601_v57, %v595_v41  ;;  %s2510_s21 = sld [smem:[#allocation6 + $0x5c]] }
 0x12c   : > { %v614_v43 = vmul.f32 %v3325_v58, %v2229_v26  ;;  %v567_v48 = vadd.f32 %v565_v32, %v2365_v24  ;;  %v2478_v37 = vadd.f32 %v604_v25, %v602_v16  ;;  %v3326_v2 = vstv %s3207_s15  ;;  %s2540_s15 = sld [smem:[#allocation6 + $0x5d]] }
 0x12d   : > { %v618_v3 = vmul.f32 %v3326_v2, %v2269_v19  ;;  %v3327_v39 = vstv %s3212_s25  ;;  %v3328_v30 = vstv %s1770_s2  ;;  %v3329_v35 = vstv %s3214_s29  ;;  %910 = vrot.lane.b32.xlu0 %v446_v51, %s1467_s17  ;;  %s1468_s2 = smov 112   ;;  %s3352_s25 = sld [smem:[#allocation64_spill]] }
 0x12e   : > { %v626_v44 = vmul.f32 %v3327_v39, %v2310_v56  ;;  %v630_v59 = vmul.f32 %v3328_v30, %v2350_v10  ;;  %v634_v4 = vmul.f32 %v3329_v35, %v2439_v34  ;;  %v636_v24 = vadd.f32 %v614_v43, %v610_v8  ;;  %912 = vrot.lane.b32.xlu1 %v447_v52, %s1467_s17  ;;  %s2565_s29 = sld [smem:[#allocation6 + $0x5f]] }
 0x12f   : > { %v2492_v20 = vadd.f32 %v605_v60, %v603_v1  ;;  %v638_v6 = vadd.f32 %v1912_v27, %v618_v3  ;;  %v3330_v45 = vmov %v3324_v53  ;;  %v3331_v18 = vmov %v3325_v58 }
 0x130   : > { %v611_v17 = vmul.f32 %v3330_v45, %v2203_v47  ;;  %v615_v61 = vmul.f32 %v3331_v18, %v2238_v49  ;;  %v640_v40 = vadd.f32 %v630_v59, %v626_v44  ;;  %v3336_v28 = vmov %v3326_v2  ;;  %v3347_v59 = vld [vmem:[#allocation77_spill] sm:$0xff] }
 0x131   : > { %v619_v27 = vmul.f32 %v3336_v28, %v2279_v21  ;;  %v3337_v0 = vmov %v3327_v39  ;;  %v833_v15 = vstv %s2448_s3  ;;  %v642_v23 = vadd.f32 %v638_v6, %v636_v24  ;;  %921 = vrot.lane.b32.xlu0 %v526_v11, %s1468_s2  ;;  %s2790_s3 = sld [smem:[#allocation6 + $0x16]] }
 0x132   : > { %v627_v54 = vmul.f32 %v3337_v0, %v2322_v7  ;;  %v3338_v29 = vmov %v3328_v30  ;;  %v3339_v51 = vmov %v3329_v35  ;;  %v637_v63 = vadd.f32 %v615_v61, %v611_v17  ;;  %923 = vrot.lane.b32.xlu1 %v527_v36, %s1468_s2 }
 0x133   : > { %v631_v9 = vmul.f32 %v3338_v29, %v2357_v42  ;;  %v635_v52 = vmul.f32 %v3339_v51, %v2467_v12  ;;  %v644_v38 = vadd.f32 %v640_v40, %v634_v4  ;;  %v639_v55 = vadd.f32 %v3340_v5, %v619_v27  ;;  %v3355_v51 = vld [vmem:[#allocation78_spill] sm:$0xff] }
 0x134   : > { %v3341_v16 = vstv %s3332_s6  ;;  %v3342_v41 = vstv %s3333_s22  ;;  %v3343_v25 = vstv %s3334_s7  ;;  %v3344_v53 = vstv %s3335_s20  ;;  %s1186_s6 = sld [smem:[#allocation6 + $0x1a]] }
 0x135   : > { %v650_v13 = vmul.f32 %v3341_v16, %v2195_v31  ;;  %v654_v50 = vmul.f32 %v3342_v41, %v2229_v26  ;;  %v641_v32 = vadd.f32 %v631_v9, %v627_v54  ;;  %v658_v57 = vmul.f32 %v3343_v25, %v2269_v19  ;;  %932 = vrot.lane.b32.xlu0 %v566_v22, %s1469_s30  ;;  %s1185_s22 = sld [smem:[#allocation6 + $0x19]] }
 0x136   : > { %v666_v8 = vmul.f32 %v3344_v53, %v2310_v56  ;;  %v3345_v1 = vstv %s1777_s19  ;;  %v646_v43 = vadd.f32 %v644_v38, %v642_v23  ;;  %v643_v60 = vadd.f32 %v639_v55, %v637_v63  ;;  %934 = vrot.lane.b32.xlu1 %v567_v48, %s1469_s30  ;;  %s3364_s19 = sld [smem:[#allocation66_spill]] }
 0x137   : > { %v670_v58 = vmul.f32 %v3345_v1, %v2350_v10  ;;  %v3346_v2 = vstv %s1782_s16  ;;  %v849_v39 = vstv %s2475_s0  ;;  %v645_v44 = vadd.f32 %v641_v32, %v635_v52  ;;  %s1470_s16 = smov 80   ;;  %s1184_s0 = sld [smem:[#allocation6 + $0x18]] }
 0x138   : > { %v674_v3 = vmul.f32 %v3346_v2, %v2439_v34  ;;  %v676_v30 = vadd.f32 %v654_v50, %v650_v13  ;;  %v678_v35 = vadd.f32 %v3347_v59, %v658_v57  ;;  %v3348_v11 = vmov %v3341_v16  ;;  %s3418_s7 = sld [smem:[#allocation21_spill]] }
 0x139   : > { %v680_v4 = vadd.f32 %v670_v58, %v666_v8  ;;  %v651_v24 = vmul.f32 %v3348_v11, %v2203_v47  ;;  %v3349_v36 = vmov %v3342_v41  ;;  %v3350_v45 = vmov %v3343_v25  ;;  %943 = vrot.lane.b32.xlu0 %v2478_v37, %s1470_s16  ;;  %s3419_s20 = sld [smem:[#allocation15_spill]] }
 0x13a   : > { %v655_v6 = vmul.f32 %v3349_v36, %v2238_v49  ;;  %v659_v17 = vmul.f32 %v3350_v45, %v2279_v21  ;;  %v3351_v18 = vmov %v3344_v53  ;;  %v647_v40 = vadd.f32 %v645_v44, %v643_v60  ;;  %945 = vrot.lane.b32.xlu1 %v2492_v20, %s1470_s16  ;;  %v3363_v44 = vld [vmem:[#allocation79_spill] sm:$0xff] }
 0x13b   : > { %v667_v61 = vmul.f32 %v3351_v18, %v2322_v7  ;;  %v682_v28 = vadd.f32 %v678_v35, %v676_v30  ;;  %v684_v27 = vadd.f32 %v680_v4, %v674_v3  ;;  %v3353_v0 = vmov %v3345_v1 }
 0x13c   : > { %v671_v54 = vmul.f32 %v3353_v0, %v2357_v42  ;;  %v3354_v23 = vmov %v3346_v2  ;;  %v677_v9 = vadd.f32 %v655_v6, %v651_v24  ;;  %v679_v52 = vadd.f32 %v3355_v51, %v659_v17 }
 0x13d   : > { %v675_v29 = vmul.f32 %v3354_v23, %v2467_v12  ;;  %v853_v63 = vstv %s2510_s21  ;;  %v686_v38 = vadd.f32 %v684_v27, %v682_v28  ;;  %v3356_v55 = vstv %s3352_s25  ;;  %954 = vrot.lane.b32.xlu0 %v646_v43, %s1465_s5  ;;  %s3420_s21 = sld [smem:[#allocation20_spill]] }
 0x13e   : > { %v681_v5 = vadd.f32 %v671_v54, %v667_v61  ;;  %v690_v16 = vmul.f32 %v3356_v55, %v2195_v31  ;;  %v3357_v22 = vstv %s1780_s11  ;;  %v683_v13 = vadd.f32 %v679_v52, %v677_v9  ;;  %v3370_v54 = vld [vmem:[#allocation80_spill] sm:$0xff]  ;;  %956 = vrot.lane.b32.xlu1 %v647_v40, %s1465_s5  ;;  %s2627_s11 = sld [smem:[#allocation6 + $0x61]] }
 0x13f   : > { %v694_v48 = vmul.f32 %v3357_v22, %v2229_v26  ;;  %v3358_v41 = vstv %s1792_s13  ;;  %v3359_v32 = vstv %s3218_s18  ;;  %v3360_v57 = vstv %s3219_s14  ;;  %s3379_s13 = sld [smem:[#allocation60_spill]] }
 0x140   : > { %v698_v50 = vmul.f32 %v3358_v41, %v2269_v19  ;;  %v706_v25 = vmul.f32 %v3359_v32, %v2310_v56  ;;  %v710_v53 = vmul.f32 %v3360_v57, %v2350_v10  ;;  %v685_v8 = vadd.f32 %v681_v5, %v675_v29  ;;  %s3381_s18 = sld [smem:[#allocation62_spill]] }
 0x141   : > { %v3361_v1 = vstv %s1824_s26  ;;  %v716_v60 = vadd.f32 %v694_v48, %v690_v16  ;;  %v3362_v2 = vmov %v3356_v55  ;;  %v3365_v35 = vmov %v3357_v22  ;;  %s3382_s26 = sld [smem:[#allocation71_spill]]  ;;  %962 = vrot.lane.b32.xlu0 %v686_v38, %s1466_s28 }
 0x142   : > { %v714_v58 = vmul.f32 %v3361_v1, %v2439_v34  ;;  %v691_v3 = vmul.f32 %v3362_v2, %v2203_v47  ;;  %v718_v30 = vadd.f32 %v3363_v44, %v698_v50  ;;  %v720_v59 = vadd.f32 %v710_v53, %v706_v25  ;;  %s3384_s14 = sld [smem:[#allocation68_spill]] }
 0x143   : > { %v695_v4 = vmul.f32 %v3365_v35, %v2238_v49  ;;  %v857_v11 = vstv %s2540_s15  ;;  %v687_v24 = vadd.f32 %v685_v8, %v683_v13  ;;  %v3366_v36 = vmov %v3358_v41  ;;  %v3377_v8 = vld [vmem:[#allocation81_spill] sm:$0xff]  ;;  %s1181_s5 = sld [smem:[#allocation6 + $0x15]]  ;;  %s1264_s15 = sshll.u32 %s3419_s20, 7 }
 0x144   : > { %v699_v37 = vmul.f32 %v3366_v36, %v2279_v21  ;;  %v3367_v6 = vmov %v3359_v32  ;;  %v3368_v45 = vmov %v3360_v57  ;;  %v722_v18 = vadd.f32 %v718_v30, %v716_v60  ;;  %s3423_s25 = sshll.u32 %s3420_s21, 3 }
 0x145   : > { %v707_v20 = vmul.f32 %v3367_v6, %v2322_v7  ;;  %v711_v17 = vmul.f32 %v3368_v45, %v2357_v42  ;;  %v724_v61 = vadd.f32 %v720_v59, %v714_v58  ;;  %v3369_v28 = vmov %v3361_v1  ;;  %964 = vrot.lane.b32.xlu1 %v687_v24, %s1466_s28  ;;  %s2792_s28 = sld [smem:[#allocation6 + $0x17]] }
 0x146   : > { %v715_v27 = vmul.f32 %v3369_v28, %v2467_v12  ;;  %v717_v0 = vadd.f32 %v695_v4, %v691_v3  ;;  %v719_v23 = vadd.f32 %v3370_v54, %v699_v37  ;;  %v3371_v9 = vstv %s3364_s19 }
 0x147   : > { %v721_v29 = vadd.f32 %v711_v17, %v707_v20  ;;  %v770_v51 = vmul.f32 %v3371_v9, %v2195_v31  ;;  %v3372_v52 = vstv %s1832_s4  ;;  %v726_v55 = vadd.f32 %v724_v61, %v722_v18  ;;  %s2709_s4 = sld [smem:[#allocation6 + $0x47]] }
 0x148   : > { %v774_v5 = vmul.f32 %v3372_v52, %v2229_v26  ;;  %v3373_v16 = vstv %s1840_s10  ;;  %v3374_v48 = vstv %s1856_s27  ;;  %v865_v41 = vstv %s2565_s29  ;;  %s2717_s10 = sld [smem:[#allocation6 + $0x48]] }
 0x149   : > { %v778_v22 = vmul.f32 %v3373_v16, %v2269_v19  ;;  %v786_v13 = vmul.f32 %v3374_v48, %v2310_v56  ;;  %v723_v50 = vadd.f32 %v719_v23, %v717_v0  ;;  %v725_v32 = vadd.f32 %v721_v29, %v715_v27  ;;  %v3389_v27 = vld [vmem:[#allocation82_spill] sm:$0xff]  ;;  %970 = vrot.lane.b32.xlu0 %v726_v55, %s1467_s17  ;;  %s2721_s27 = sld [smem:[#allocation6 + $0x49]] }
 0x14a   : > { %v3375_v43 = vstv %s3222_s23  ;;  %v3376_v25 = vstv %s3223_s9  ;;  %v796_v53 = vadd.f32 %v774_v5, %v770_v51  ;;  %v3378_v58 = vmov %v3371_v9  ;;  %s2699_s9 = sld [smem:[#allocation6 + $0x46]] }
 0x14b   : > { %v790_v40 = vmul.f32 %v3375_v43, %v2350_v10  ;;  %v794_v57 = vmul.f32 %v3376_v25, %v2439_v34  ;;  %v798_v1 = vadd.f32 %v3377_v8, %v778_v22  ;;  %v771_v60 = vmul.f32 %v3378_v58, %v2203_v47  ;;  %s2733_s23 = sld [smem:[#allocation6 + $0x4a]] }
 0x14c   : > { %v3380_v2 = vmov %v3372_v52  ;;  %v727_v44 = vadd.f32 %v725_v32, %v723_v50  ;;  %v3383_v59 = vmov %v3373_v16  ;;  %v3385_v4 = vmov %v3374_v48 }
 0x14d   : > { %v775_v3 = vmul.f32 %v3380_v2, %v2238_v49  ;;  %v800_v30 = vadd.f32 %v790_v40, %v786_v13  ;;  %v779_v35 = vmul.f32 %v3383_v59, %v2279_v21  ;;  %v787_v36 = vmul.f32 %v3385_v4, %v2322_v7  ;;  %v3395_v40 = vld [vmem:[#allocation83_spill] sm:$0xff] }
 0x14e   : > { %v802_v37 = vadd.f32 %v798_v1, %v796_v53  ;;  %v3387_v6 = vmov %v3375_v43  ;;  %v3388_v45 = vmov %v3376_v25  ;;  %v869_v18 = vstv %s2597_s24  ;;  %972 = vrot.lane.b32.xlu1 %v727_v44, %s1467_s17  ;;  %s1187_s17 = sld [smem:[#allocation6 + $0x1b]] }
 0x14f   : > { %v791_v20 = vmul.f32 %v3387_v6, %v2357_v42  ;;  %v795_v17 = vmul.f32 %v3388_v45, %v2467_v12  ;;  %v804_v61 = vadd.f32 %v800_v30, %v794_v57  ;;  %v797_v28 = vadd.f32 %v775_v3, %v771_v60  ;;  %s3425_s24 = sld [smem:[#allocation98_spill]] }
 0x150   : > { %v799_v0 = vadd.f32 %v3389_v27, %v779_v35  ;;  %v3390_v54 = vstv %s3379_s13  ;;  %v3391_v24 = vstv %s3381_s18  ;;  %v3392_v9 = vstv %s3382_s26  ;;  %s1054_s13 = scalar_lea.sflag [#allocation4], %s3420_s21  ;;  %s1471_s26 = smov [#allocation7]  }
 0x151   : > { %v810_v38 = vmul.f32 %v3390_v54, %v2195_v31  ;;  %v801_v23 = vadd.f32 %v791_v20, %v787_v36  ;;  %v814_v29 = vmul.f32 %v3391_v24, %v2229_v26  ;;  %v818_v51 = vmul.f32 %v3392_v9, %v2269_v19  ;;  %v3401_v20 = vld [vmem:[#allocation86_spill] sm:$0xff] }
 0x152   : > { %v3393_v52 = vstv %s3384_s14  ;;  %v806_v16 = vadd.f32 %v804_v61, %v802_v37  ;;  %v803_v22 = vadd.f32 %v799_v0, %v797_v28  ;;  %v3394_v48 = vstv %s3386_s1  ;;  %s1391_s14 = sshll.u32 %s1471_s26, 4  ;;  %s1392_s14 = int_to_ptr.vmem [resolvable:$false] %s1391_s14 }
 0x153   : > { %v826_v5 = vmul.f32 %v3393_v52, %v2310_v56  ;;  %v830_v13 = vmul.f32 %v3394_v48, %v2350_v10  ;;  %v834_v50 = vmul.f32 %v833_v15, %v2439_v34  ;;  %v805_v32 = vadd.f32 %v801_v23, %v795_v17  ;;  %s1393_s1 = scalar_lea.vmem %s1392_s14, 256 }
 0x154   : > { %v836_v43 = vadd.f32 %v814_v29, %v810_v38  ;;  %v838_v25 = vadd.f32 %v3395_v40, %v818_v51  ;;  %v873_v57 = vstv %s2627_s11  ;;  %v3396_v8 = vmov %v3390_v54  ;;  %978 = vrot.lane.b32.xlu0 %v806_v16, %s1468_s2 }
 0x155   : > { %v840_v53 = vadd.f32 %v830_v13, %v826_v5  ;;  %v811_v1 = vmul.f32 %v3396_v8, %v2203_v47  ;;  %v3397_v58 = vmov %v3391_v24  ;;  %v3398_v2 = vmov %v3392_v9  ;;  %v3402_v9 = vld [vmem:[#allocation87_spill] sm:$0xff]  ;;  %s1066_s11 = scalar_lea.hbm %s3425_s24, %s1264_s15 }
 0x156   : > { %v815_v60 = vmul.f32 %v3397_v58, %v2238_v49  ;;  %v819_v3 = vmul.f32 %v3398_v2, %v2279_v21  ;;  %v807_v55 = vadd.f32 %v805_v32, %v803_v22  ;;  %v842_v30 = vadd.f32 %v838_v25, %v836_v43 }
 0x157   : > { %v3399_v44 = vmov %v3393_v52  ;;  %v3400_v35 = vmov %v3394_v48  ;;  %v844_v36 = vadd.f32 %v840_v53, %v834_v50  ;;  %v835_v37 = vmul.f32 %v833_v15, %v2467_v12 }
 0x158   : > { %v827_v59 = vmul.f32 %v3399_v44, %v2322_v7  ;;  %v831_v4 = vmul.f32 %v3400_v35, %v2357_v42  ;;  %v837_v6 = vadd.f32 %v815_v60, %v811_v1  ;;  %v839_v45 = vadd.f32 %v3401_v20, %v819_v3  ;;  %980 = vrot.lane.b32.xlu1 %v807_v55, %s1468_s2  ;;  %v3404_v3 = vld [vmem:[#allocation26_spill] sm:$0xff]  ;;  %s3422_s2 = sld [smem:[#allocation19_spill]] }
 0x159   : > { %v850_v61 = vmul.f32 %v849_v39, %v2195_v31  ;;  %v854_v28 = vmul.f32 %v853_v63, %v2229_v26  ;;  %v846_v15 = vadd.f32 %v844_v36, %v842_v30  ;;  %v858_v0 = vmul.f32 %v857_v11, %v2269_v19  ;;  %v3405_v30 = vld [vmem:[#allocation25_spill] sm:$0xff] }
 0x15a   : > { %v841_v17 = vadd.f32 %v831_v4, %v827_v59  ;;  %v843_v27 = vadd.f32 %v839_v45, %v837_v6  ;;  %v866_v54 = vmul.f32 %v865_v41, %v2310_v56  ;;  %v870_v23 = vmul.f32 %v869_v18, %v2350_v10 }
 0x15b   : > { %v874_v24 = vmul.f32 %v873_v57, %v2439_v34  ;;  %v876_v29 = vadd.f32 %v854_v28, %v850_v61  ;;  %v878_v51 = vadd.f32 %v3402_v9, %v858_v0  ;;  %v851_v52 = vmul.f32 %v849_v39, %v2203_v47  ;;  %986 = vrot.lane.b32.xlu0 %v846_v15, %s1469_s30 }
 0x15c   : > { %v845_v38 = vadd.f32 %v841_v17, %v835_v37  ;;  %v855_v5 = vmul.f32 %v853_v63, %v2238_v49  ;;  %v859_v16 = vmul.f32 %v857_v11, %v2279_v21  ;;  %v880_v48 = vadd.f32 %v870_v23, %v866_v54  ;;  %v3403_v63 = vld [vmem:[#allocation88_spill] sm:$0xff] }
 0x15d   : > { %v867_v13 = vmul.f32 %v865_v41, %v2322_v7  ;;  %v871_v50 = vmul.f32 %v869_v18, %v2357_v42  ;;  %v875_v39 = vmul.f32 %v873_v57, %v2467_v12  ;;  %v882_v32 = vadd.f32 %v878_v51, %v876_v29 }
 0x15e   : > { %v847_v22 = vadd.f32 %v845_v38, %v843_v27  ;;  %v879_v11 = vadd.f32 %v3403_v63, %v859_v16  ;;  %v884_v43 = vadd.f32 %v880_v48, %v874_v24  ;;  %v877_v41 = vadd.f32 %v855_v5, %v851_v52  ;;  %p3426_p11 = scmp.ne.s32.totalorder %s3422_s2, 0 }
 0x15f   : > { %v881_v18 = vadd.f32 %v871_v50, %v867_v13  ;;  %v741_v8 = vstv %s2721_s27  ;;  %v733_v1 = vstv %s2709_s4  ;;  %v737_v58 = vstv %s2717_s10 }
 0x160   : > { %988 = vrot.lane.b32.xlu1 %v847_v22, %s1469_s30  ;;  %v886_v40 = vadd.f32 %v884_v43, %v882_v32  ;;  %v883_v25 = vadd.f32 %v879_v11, %v877_v41  ;;  %v729_v60 = vstv %s2699_s9  ;;  %v745_v2 = vstv %s2733_s23  ;;  %s173_s30 = scalar_lea.vmem [#allocation7], %s3423_s25 }
 0x161   : > { %v885_v53 = vadd.f32 %v881_v18, %v875_v39  ;;  %v742_v55 = vmul.f32 %v741_v8, %v3404_v3  ;;  %v743_v44 = vmul.f32 %v741_v8, %v3405_v30  ;;  %v749_v59 = vstv %s2740_s12  ;;  %v3408_v8 = vld [vmem:[#allocation93_spill] sm:$0xff]  ;;  %s1068_s29 = sshll.u32 %s173_s30, 4  ;;  %s1069_s29 = int_to_ptr.vmem [resolvable:$true] %s1068_s29 }
 0x162   : > { %994 = vrot.lane.b32.xlu0 %v886_v40, %s1470_s16  ;;  %v753_v35 = vstv %s2744_s8  ;;  %v734_v4 = vmul.f32 %v733_v1, %v2229_v26  ;;  %v735_v36 = vmul.f32 %v733_v1, %v2238_v49  ;;  %v738_v37 = vmul.f32 %v737_v58, %v2269_v19  ;;  %v3406_v40 = vld [vmem:[#allocation94_spill] sm:$0xff]  ;;  %s1387_s18 = scalar_lea.vmem %s1069_s29, 128  ;;  %p1394_p2 = scmp.lt.s32.totalorder %s1069_s29, %s1392_s14 }
 0x163   : > { %v887_v57 = vadd.f32 %v885_v53, %v883_v25  ;;  %v739_v6 = vmul.f32 %v737_v58, %v2279_v21  ;;  %v730_v20 = vmul.f32 %v729_v60, %v2195_v31  ;;  %v731_v45 = vmul.f32 %v729_v60, %v2203_v47  ;;  %v3407_v53 = vld [vmem:[#allocation23_spill] sm:$0xff]  ;;  %p1388_p9 = scmp.ne.s32.totalorder %s1069_s29, %s1387_s18  ;;  %p1395_p1 = scmp.lt.s32.totalorder %s1393_s1, %s1387_s18 }
 0x164   : > { %v746_v17 = vmul.f32 %v745_v2, %v2310_v56  ;;  %v747_v61 = vmul.f32 %v745_v2, %v2322_v7  ;;  %v750_v28 = vmul.f32 %v749_v59, %v2350_v10  ;;  %v751_v15 = vmul.f32 %v749_v59, %v2357_v42  ;;  %v3409_v2 = vld [vmem:[#allocation95_spill] sm:$0xff]  ;;  %v3411_v59 = vld [vmem:[#allocation84_spill] sm:$0xff] }
 0x165   : > { %996 = vrot.lane.b32.xlu1 %v887_v57, %s1470_s16  ;;  %v754_v26 = vmul.f32 %v753_v35, %v2439_v34  ;;  %v755_v49 = vmul.f32 %v753_v35, %v2467_v12  ;;  %v756_v27 = vadd.f32 %v734_v4, %v730_v20  ;;  %v757_v19 = vadd.f32 %v735_v36, %v731_v45  ;;  %v3412_v4 = vld [vmem:[#allocation89_spill] sm:$0xff]  ;;  %p1389_p13 = pnand %p1388_p9, %p3426_p11  ;;  %p1396_p0 = por %p1395_p1, %p1394_p2 }
 0x166   : > { %v758_v0 = vadd.f32 %v742_v55, %v738_v37  ;;  %v759_v21 = vadd.f32 %v743_v44, %v739_v6  ;;  %v760_v54 = vadd.f32 %v750_v28, %v746_v17  ;;  %v761_v31 = vadd.f32 %v751_v15, %v747_v61  ;;  %v3410_v55 = vld [vmem:[#allocation24_spill] sm:$0xff]  ;;  %v3413_v37 = vld [vmem:[#allocation91_spill] sm:$0xff]  ;;  %v3414_v45 = vld [vmem:[#allocation85_spill] sm:$0xff] }
 0x167   : > { %v449_v39 = vstv %s1181_s5  ;;  %v461_v63 = vstv %s1184_s0  ;;  %v469_v11 = vstv %s1186_s6  ;;  %v453_v32 = vstv %s2790_s3  ;;  %v3415_v61 = vld [vmem:[#allocation90_spill] sm:$0xff]  ;;  %v3416_v15 = vld [vmem:[#allocation92_spill] sm:$0xff]  ;;  %p1390_p10 = pneg %p1389_p13 }
 0x168   : > { %v762_v38 = vadd.f32 %v758_v0, %v756_v27  ;;  %v763_v47 = vadd.f32 %v759_v21, %v757_v19  ;;  %v764_v23 = vadd.f32 %v760_v54, %v754_v26  ;;  %v765_v56 = vadd.f32 %v761_v31, %v755_v49 }
 0x169   : > { %v457_v43 = vstv %s2792_s28  ;;  %v465_v41 = vstv %s1185_s22  ;;  %v473_v18 = vstv %s1187_s17  ;;  %v450_v25 = vmul.f32 %v449_v39, %v3406_v40  ;;  %p1397_p3 = pnand %p1396_p0, %p1390_p10 }
 0x16a   : > { %v2770_v24 = vadd.f32 %v764_v23, %v762_v38  ;;  %v2772_v7 = vadd.f32 %v765_v56, %v763_v47  ;;  %v462_v57 = vmul.f32 %v461_v63, %v3407_v53  ;;  %v470_v1 = vmul.f32 %v469_v11, %v3408_v8  ;;  %v3417_v23 = vld [vmem:[#allocation73_spill] sm:$0xff] }
 0x16b   : > { %vm903_vm3 = vcmp.lt.s32.totalorder %v1762_v33, 32  ;;  %v451_v3 = vmul.f32 %v449_v39, %v3409_v2  ;;  %v463_v30 = vmul.f32 %v461_v63, %v3410_v55  ;;  %v471_v44 = vmul.f32 %v469_v11, %v2151_v62 }
 0x16c   : > { %v454_v35 = vmul.f32 %v453_v32, %v3411_v59  ;;  %v458_v36 = vmul.f32 %v457_v43, %v3412_v4  ;;  %v466_v6 = vmul.f32 %v465_v41, %v3413_v37  ;;  %v474_v20 = vmul.f32 %v473_v18, %v2386_v46 }
 0x16d   : > { %v455_v17 = vmul.f32 %v453_v32, %v3414_v45  ;;  %v459_v28 = vmul.f32 %v457_v43, %v3415_v61  ;;  %v467_v26 = vmul.f32 %v465_v41, %v3416_v15  ;;  %v475_v49 = vmul.f32 %v473_v18, %v2390_v14 }
 0x16e   : > { %vm892_vm4 = vcmp.lt.s32.totalorder %v1762_v33, 48  ;;  %vm895_vm5 = vcmp.ge.s32.totalorder %v1762_v33, 48  ;;  %v476_v62 = vadd.f32 %v454_v35, %v450_v25  ;;  %v480_v27 = vadd.f32 %v470_v1, %v466_v6 }
 0x16f   : > { %vm906_vm6 = vcmp.ge.s32.totalorder %v1762_v33, 32  ;;  %v477_v21 = vadd.f32 %v455_v17, %v451_v3  ;;  %v481_v46 = vadd.f32 %v471_v44, %v467_v26  ;;  %vm914_vm7 = vcmp.lt.s32.totalorder %v1762_v33, 16 }
 0x170   : > { %v478_v14 = vadd.f32 %v462_v57, %v458_v36  ;;  %v484_v31 = vadd.f32 %v480_v27, %v474_v20  ;;  %vm917_vm8 = vcmp.ge.s32.totalorder %v1762_v33, 16  ;;  %v479_v38 = vadd.f32 %v463_v30, %v459_v28 }
 0x171   : > { %v485_v47 = vadd.f32 %v481_v46, %v475_v49  ;;  %vm925_vm9 = vcmp.lt.s32.totalorder %v1762_v33, 112  ;;  %vm929_vm10 = vcmp.lt.s32.totalorder %v3417_v23, 240  ;;  %vm936_vm11 = vcmp.lt.s32.totalorder %v1762_v33, 96 }
 0x172   : > { %v482_v39 = vadd.f32 %v478_v14, %v476_v62  ;;  %v483_v18 = vadd.f32 %v479_v38, %v477_v21  ;;  %vm947_vm12 = vcmp.lt.s32.totalorder %v1762_v33, 80  ;;  %vm940_vm13 = vcmp.lt.s32.totalorder %v3417_v23, 224 }
 0x173   : > { %vm951_vm14 = vcmp.lt.s32.totalorder %v3417_v23, 208 }
 0x174   : > { %v486_v40 = vadd.f32 %v484_v31, %v482_v39  ;;  %v487_v53 = vadd.f32 %v485_v47, %v483_v18 }
 0x197   : > { %v2774_v10 = vpop.permute.xlu0 %888  ;;  %v2776_v42 = vpop.permute.xlu1 %890 }
 0x198   : > { %v894_v56 = vsel %vm892_vm4, %v2776_v42, %v2774_v10 }
 0x19b   : > { %v2778_v34 = vpop.permute.xlu0 %899  ;;  %v2780_v12 = vpop.permute.xlu1 %901 }
 0x19c   : > { %v905_v54 = vsel %vm903_vm3, %v2780_v12, %v2778_v34  ;;  %v904_v43 = vsel %vm903_vm3, %v2778_v34, %v2780_v12  ;;  %v893_v34 = vsel %vm892_vm4, %v2774_v10, %v2776_v42  ;;  %v897_v12 = vsel %vm895_vm5, %v894_v56, 0.0 }
 0x19d   : > { %v908_v41 = vsel %vm906_vm6, %v905_v54, 0.0  ;;  %v1003_v1 = vadd.f32 %v904_v43, %v893_v34 }
 0x19e   : > { %v1002_v8 = vadd.f32 %v908_v41, %v897_v12 }
 0x19f   : > { %v2782_v29 = vpop.permute.xlu0 %910 }
 0x1a0   : > { %v2784_v9 = vpop.permute.xlu1 %912 }
 0x1a1   : > { %v916_v63 = vsel %vm914_vm7, %v2784_v9, %v2782_v29  ;;  %v915_v42 = vsel %vm914_vm7, %v2782_v29, %v2784_v9 }
 0x1a2   : > { %v919_v57 = vsel %vm917_vm8, %v916_v63, 0.0  ;;  %v1005_v45 = vadd.f32 %v915_v42, %v487_v53 }
 0x1a3   : > { %v2786_v51 = vpop.permute.xlu0 %921  ;;  %v1004_v59 = vadd.f32 %v919_v57, %v486_v40 }
 0x1a4   : > { %v2788_v52 = vpop.permute.xlu1 %923 }
 0x1a5   : > { %v927_v35 = vsel %vm925_vm9, %v2788_v52, %v2786_v51  ;;  %v1016_v62 = vadd.f32 %v1004_v59, %v1002_v8 }
 0x1a7   : > { %v2794_v5 = vpop.permute.xlu0 %932 }
 0x1a8   : > { %v2796_v16 = vpop.permute.xlu1 %934 }
 0x1a9   : > { %v938_v2 = vsel %vm936_vm11, %v2796_v16, %v2794_v5  ;;  %v937_v29 = vsel %vm936_vm11, %v2794_v5, %v2796_v16 }
 0x1ab   : > { %v2798_v22 = vpop.permute.xlu0 %943 }
 0x1ac   : > { %v2800_v48 = vpop.permute.xlu1 %945 }
 0x1ad   : > { %v949_v3 = vsel %vm947_vm12, %v2800_v48, %v2798_v22  ;;  %v948_v4 = vsel %vm947_vm12, %v2798_v22, %v2800_v48  ;;  %v926_v22 = vsel %vm925_vm9, %v2786_v51, %v2788_v52  ;;  %v931_v48 = vsel %vm929_vm10, %v927_v35, 0.0  ;;  %v3424_v35 = vld [vmem:[#allocation22_spill] sm:$0xff] }
 0x1ae   : > { %v953_v36 = vsel %vm951_vm14, %v949_v3, 0.0  ;;  %v1006_v61 = vadd.f32 %v937_v29, %v926_v22 }
 0x1af   : > { %v2802_v13 = vpop.permute.xlu0 %954 }
 0x1b0   : > { %v2804_v50 = vpop.permute.xlu1 %956 }
 0x1b1   : > { %v959_v25 = vsel %vm892_vm4, %v2804_v50, %v2802_v13  ;;  %v958_v55 = vsel %vm892_vm4, %v2802_v13, %v2804_v50  ;;  %v942_v50 = vsel %vm940_vm13, %v938_v2, 0.0 }
 0x1b2   : > { %v960_v30 = vsel %vm895_vm5, %v959_v25, 0.0  ;;  %v1009_v5 = vadd.f32 %v958_v55, %v953_v36  ;;  %v1007_v28 = vadd.f32 %v942_v50, %v931_v48 }
 0x1b3   : > { %v2811_v58 = vpop.permute.xlu0 %962  ;;  %v1008_v6 = vadd.f32 %v960_v30, %v948_v4 }
 0x1b4   : > { %v1019_v46 = vadd.f32 %v1009_v5, %v1007_v28 }
 0x1b5   : > { %v1018_v21 = vadd.f32 %v1008_v6, %v1006_v61 }
 0x1b7   : > { %v2813_v60 = vpop.permute.xlu1 %964 }
 0x1b8   : > { %v967_v16 = vsel %vm903_vm3, %v2813_v60, %v2811_v58  ;;  %v966_v54 = vsel %vm903_vm3, %v2811_v58, %v2813_v60  ;;  %v1017_v60 = vadd.f32 %v1005_v45, %v1003_v1  ;;  %v3421_v1 = vlaneseq }
 0x1b9   : > { %v968_v27 = vsel %vm906_vm6, %v967_v16, 0.0 }
 0x1ba   : > { %v1023_v43 = vadd.f32 %v1019_v46, %v1017_v60  ;;  %v1039_v2 = vshrl.u32 %v3421_v1, 7 }
 0x1bb   : > { %v971_v19 = vpop.permute.xlu0 %970 }
 0x1bc   : > { %v1040_v3 = vsub.s32 0, %v1039_v2 }
 0x1c0   : > { %v973_v0 = vpop.permute.xlu1 %972 }
 0x1c1   : > { %v975_v9 = vsel %vm914_vm7, %v973_v0, %v971_v19  ;;  %v974_v15 = vsel %vm914_vm7, %v971_v19, %v973_v0 }
 0x1c2   : > { %v976_v17 = vsel %vm917_vm8, %v975_v9, 0.0 }
 0x1c3   : > { %v1010_v19 = vadd.f32 %v976_v17, %v968_v27 }
 0x1c6   : > { %v979_v11 = vpop.permute.xlu0 %978 }
 0x1ca   : > { %v981_v32 = vpop.permute.xlu1 %980 }
 0x1cb   : > { %v983_v44 = vsel %vm925_vm9, %v981_v32, %v979_v11  ;;  %v982_v37 = vsel %vm925_vm9, %v979_v11, %v981_v32  ;;  %v1022_v11 = vadd.f32 %v1018_v21, %v1016_v62 }
 0x1cc   : > { %v985_v20 = vsel %vm929_vm10, %v983_v44, 0.0  ;;  %v1012_v26 = vadd.f32 %v982_v37, %v2770_v24  ;;  %v1011_v24 = vadd.f32 %v974_v15, %v966_v54  ;;  %v1343_v44 = vld [vmem:[%s3418_s7] sm:$0xff] }
 0x1cd   : > { %v987_v10 = vpop.permute.xlu0 %986  ;;  %v1013_v51 = vadd.f32 %v985_v20, %v2772_v7 }
 0x1ce   : > { %v1020_v38 = vadd.f32 %v1012_v26, %v1010_v19 }
 0x1cf   : > { %v1021_v39 = vadd.f32 %v1013_v51, %v1011_v24 }
 0x1d2   : > { %v989_v13 = vpop.permute.xlu1 %988 }
 0x1d3   : > { %v991_v52 = vsel %vm936_vm11, %v989_v13, %v987_v10  ;;  %v990_v14 = vsel %vm936_vm11, %v987_v10, %v989_v13 }
 0x1d4   : > { %v995_v49 = vpop.permute.xlu0 %994  ;;  %v993_v47 = vsel %vm940_vm13, %v991_v52, 0.0 }
 0x1d7   : > { %v997_v0 = vpop.permute.xlu1 %996 }
 0x1d8   : > { %v998_v31 = vsel %vm947_vm12, %v995_v49, %v997_v0  ;;  %v999_v7 = vsel %vm947_vm12, %v997_v0, %v995_v49 }
 0x1d9   : > { %v1001_v56 = vsel %vm951_vm14, %v999_v7, 0.0  ;;  %v1014_v58 = vadd.f32 %v998_v31, %v990_v14 }
 0x1da   : > { %v1015_v63 = vadd.f32 %v1001_v56, %v993_v47 }
 0x1db   : > { %v1024_v32 = vadd.f32 %v1020_v38, %v1014_v58 }
 0x1dc   : > { %v1025_v41 = vadd.f32 %v1021_v39, %v1015_v63 }
 0x1dd   : > { %v1026_v18 = vadd.f32 %v1024_v32, %v1022_v11 }
 0x1de   : > { %v1027_v40 = vadd.f32 %v1025_v41, %v1023_v43 }
 0x1df   : > { %v1028_v25 = vsub.f32 0.0, %v1026_v18 }
 0x1e0   : > { %v1029_v33 = vsub.f32 0.0, %v1027_v40 }
 0x1e1   : > { %v1030_v34 = vmul.f32 1.442695, %v1028_v25 }
 0x1e2   : > { %v1032_v12 = vmul.f32 1.442695, %v1029_v33 }
 0x1e3   : > { %1335 = vpow2.f32 %v1030_v34 }
 0x1e4   : > { %1337 = vpow2.f32 %v1032_v12 }
 0x1f0   : > { %v1336_v23 = vpop.eup %1335 }
 0x1f1   : > { %v1338_v53 = vpop.eup %1337  ;;  %v1034_v57 = vadd.f32 1.0, %v1336_v23 }
 0x1f2   : > { %v1035_v8 = vadd.f32 1.0, %v1338_v53 }
 0x1f3   : > { %1339 = vrcp.f32 %v1034_v57 }
 0x1f4   : > { %1341 = vrcp.f32 %v1035_v8 }
 0x200   : > { %v1340_v10 = vpop.eup %1339 }
 0x201   : > { %v1342_v42 = vpop.eup %1341  ;;  %v1041_v55 = vrot.slane %v1340_v10, %v1040_v3 }
 0x202   : > { %v1045_v30 = vrot.slane %v1342_v42, %v1040_v3 }
 0x203   : > { %v1046_v59 = vmul.f32 %v1343_v44, %v1041_v55 }
 0x204   : > { %v1047_v29 = vmul.f32 %v1045_v30, %v3424_v35 }
 0x206   : > { %v1050_v9 = vcombine.low %v1046_v59, %v1047_v29 }
 0x208   : > { %1052 = vst [vmem:[%s173_s30] sm:$0xff] %v1050_v9 }
 0x209   : > { %1400 = shalt.err (!%p1397_p3)
}
 0x20a   : > { %s1401_s9 = scalar_lea.hbm %s1066_s11, 128  ;;  %s1405_s27 = scalar_lea.hbm %s3425_s24, 256 }
 0x20b   : > { %p1402_p12 = scmp.ne.s32.totalorder %s1066_s11, %s1401_s9  ;;  %p1406_p4 = scmp.lt.s32.totalorder %s1066_s11, %s3425_s24 }
 0x20c   : > { %p1407_p6 = scmp.lt.s32.totalorder %s1405_s27, %s1401_s9 }
 0x20d   : > { %p1403_p5 = pnand %p1402_p12, %p3426_p11 }
 0x20e   : > { %p1408_p8 = por %p1407_p6, %p1406_p4 }
 0x20f   : > { %p1404_p7 = pneg %p1403_p5 }
 0x211   : > { %p1409_p9 = pnand %p1408_p8, %p1404_p7 }
 0x213   : > { %1412 = shalt.err (!%p1409_p9)
}
 0x214   : > { %1271 = dma.vmem_to_hbm [thread:$0]  (%p3426_p11), %s1069_s29, 128, %s1066_s11, %s1054_s13  }
 0x215 PF: > { %s3427_s8 = sld [smem:[#allocation11_spill]] }
 0x216   : > { %s3428_s5 = sld [smem:[#allocation16_spill]] }
 0x217   : > { %s3429_s3 = sld [smem:[#allocation14_spill]] }
 0x21b   : > { %s1080_s28 = sand.u32 1, %s3427_s8  }
 0x21c   : > { %p3430_p13 = scmp.ne.s32.totalorder %s3428_s5, 0  ;;  %s1081_s0 = scalar_lea.sflag [#allocation4], %s1080_s28 }
 0x21d   : > { %p3431_p10 = scmp.ge.s32.totalorder %s3429_s3, 2 }
 0x21f   : > { %p1282_p2 = pnand %p3431_p10, %p3430_p13 }
 0x221   : > { %p1283_p1 = pneg %p1282_p2 }
 0x223   : > { %1438 = dma.done.wait (%p1283_p1), %s1081_s0, 128  }
 0x224   : > { %1440 = vsyncadd (%p1283_p1), %s1081_s0, 4294967168  ;;  %s3432_s12 = sld [smem:[#allocation17_spill]] }
 0x225   : > { %s3433_s9 = sld [smem:[#allocation12_spill]] }
 0x226   : > { %s3434_s10 = sld [smem:[#allocation13_spill]] }
 0x227   : > { %s3435_s11 = sld [smem:[#allocation18_spill]] }
 0x22a   : > { %p16_p0 = scmp.ge.s32.totalorder %s3432_s12, 4  }
 0x22c   :  { %18 = sbr.rel (!%p16_p0) target bundleno = 10 (0xa), region = 78 }
 0x231   :  { %1086 = vsyncpa [#allocation3], 1 }
 0x232   :  { %1088 = vsyncpa [#allocation3 + $0x1], 1 }
 0x233   :  { %1089 = vsyncpa [#allocation4], 1 }
 0x234   :  { %1091 = vsyncpa [#allocation4 + $0x1], 1 }
 0x235   :  { %1092 = vsyncpa [#allocation5], 1 }
 0x236   :  { %1094 = vsyncpa [#allocation5 + $0x1], 1 }

</bundles_post_ra>
